<compile_context>
chip_gen: v6e
topology: v6e:2x2x1
jax: 0.10.0
libtpu: 0.0.40
codegen_flags: <defaults>
</compile_context>

<pallas_src>
import math
from functools import partial

import jax
import jax.numpy as jnp
from jax.experimental import pallas as pl
from jax.experimental.pallas import tpu as pltpu


DO_IMPROVED_SELF_ATTENTION = False  # global flag referenced by the PyTorch spec


# ----------------------------------------------------------------------------
# shared math helpers (used inside the kernel and by the plain-JAX reference)
# ----------------------------------------------------------------------------
def _layer_norm(x, gamma, beta, eps):
    mu = jnp.mean(x, axis=-1, keepdims=True)
    var = jnp.mean(jnp.square(x - mu), axis=-1, keepdims=True)
    return (x - mu) * jax.lax.rsqrt(var + eps) * gamma + beta


def _embed(token_ids, params):
    """tokenEmbedding(ids) * sqrt(H) + positionalEncoding (dropout = identity)."""
    tok = jnp.take(params["tok_emb"], token_ids, axis=0)          # [B, S, H]
    S = token_ids.shape[1]
    H = params["tok_emb"].shape[1]
    pos = params["pos_emb"][:S]                                   # [S, H]
    return tok * jnp.float32(math.sqrt(H)) + pos[None, :, :]


# ----------------------------------------------------------------------------
# Pallas kernel: one (batch-block, layer) grid step of the encoder stack
# ----------------------------------------------------------------------------
def _encoder_layer_kernel(x_ref,
                          wqkv_ref, bqkv_ref, wo_ref, bo_ref,
                          ln1_g_ref, ln1_b_ref,
                          w1_ref, b1_ref, w2_ref, b2_ref,
                          ln2_g_ref, ln2_b_ref,
                          out_ref,
                          *, num_heads, inv_scale, eps, improved):
    layer = pl.program_id(1)
    bf16, f32 = jnp.bfloat16, jnp.float32

    # Layer 0: seed the resident residual stream (the output block, which the
    # layer-independent out index_map keeps in VMEM across the layer axis).
    @pl.when(layer == 0)
    def _init():
        out_ref[...] = x_ref[...].astype(out_ref.dtype)

    x = out_ref[...].astype(f32)                         # [Bt, S, H]
    Bt, S, H = x.shape
    hd = H // num_heads

    # ---------------- self-attention ---------------------------------------
    if improved:        # pre-LN on the attention input
        a_in = _layer_norm(x, ln1_g_ref[0], ln1_b_ref[0], eps)
    else:               # post-LN: attention sees the raw residual stream
        a_in = x

    # fused QKV projection: one lane-dense [Bt*S, H] @ [H, 3H] MXU matmul
    a2 = a_in.reshape(Bt * S, H).astype(bf16)
    qkv = jnp.dot(a2, wqkv_ref[0], preferred_element_type=f32) + bqkv_ref[0]

    ctx_rows = []
    for b in range(Bt):                                  # static unroll, Bt small
        row = qkv[b * S:(b + 1) * S]                     # [S, 3H]
        qh = jnp.swapaxes(row[:, 0:H].reshape(S, num_heads, hd), 0, 1).astype(bf16)
        kh = jnp.swapaxes(row[:, H:2 * H].reshape(S, num_heads, hd), 0, 1).astype(bf16)
        vh = jnp.swapaxes(row[:, 2 * H:3 * H].reshape(S, num_heads, hd), 0, 1).astype(bf16)

        energy = jnp.einsum('hqd,hkd->hqk', qh, kh,
                            preferred_element_type=f32) * inv_scale     # [nH, S, S]
        # TODO(synk): mask != None path (masked_fill(mask==0, -1e10)) not implemented.
        m = jnp.max(energy, axis=-1, keepdims=True)
        e = jnp.exp(energy - m)
        attn = e * pl.reciprocal(jnp.sum(e, axis=-1, keepdims=True), approx=True)

        ctx = jnp.einsum('hqk,hkd->hqd', attn.astype(bf16), vh,
                         preferred_element_type=f32)                    # [nH, S, hd]
        # reassemble heads into the hidden dim (matches torch permute+view)
        ctx_rows.append(jnp.swapaxes(ctx, 0, 1).reshape(S, H))

    ctx_all = ctx_rows[0] if Bt == 1 else jnp.concatenate(ctx_rows, axis=0)   # [Bt*S, H]

    # output projection: single lane-dense [Bt*S, H] @ [H, H] dot; the head
    # reduction is the MXU contraction dimension (no [nH, S, H] intermediate).
    attn_out = (jnp.dot(ctx_all.astype(bf16), wo_ref[0],
                        preferred_element_type=f32) + bo_ref[0]).reshape(Bt, S, H)

    if improved:
        x = x + attn_out
    else:
        x = _layer_norm(x + attn_out, ln1_g_ref[0], ln1_b_ref[0], eps)

    # ---------------- feed-forward ------------------------------------------
    x2 = x.reshape(Bt * S, H).astype(bf16)
    h1 = jnp.maximum(jnp.dot(x2, w1_ref[0], preferred_element_type=f32) + b1_ref[0], 0.0)
    h2 = jnp.dot(h1.astype(bf16), w2_ref[0], preferred_element_type=f32) + b2_ref[0]

    x = _layer_norm(x + h2.reshape(Bt, S, H), ln2_g_ref[0], ln2_b_ref[0], eps)

    out_ref[...] = x.astype(out_ref.dtype)


# ----------------------------------------------------------------------------
# host-side weight preparation: fuse QKV, pre-transpose, cast to bf16
# ----------------------------------------------------------------------------
def _prep_layer_params(params):
    L, H, _ = params["wq"].shape

    def t(w):     # torch Linear weight [L, H_out, H_in] -> bf16 W^T [L, H_in, H_out]
        return jnp.swapaxes(w, 1, 2).astype(jnp.bfloat16)

    def row(b):   # [L, H] -> f32 [L, 1, H]
        return b.reshape(L, 1, -1).astype(jnp.float32)

    wqkv = jnp.concatenate([jnp.swapaxes(params["wq"], 1, 2),
                            jnp.swapaxes(params["wk"], 1, 2),
                            jnp.swapaxes(params["wv"], 1, 2)],
                           axis=2).astype(jnp.bfloat16)            # [L, H, 3H]
    bqkv = jnp.concatenate([params["bq"], params["bk"], params["bv"]],
                           axis=1).reshape(L, 1, 3 * H).astype(jnp.float32)

    return dict(
        wqkv=wqkv, bqkv=bqkv,
        wo=t(params["wo"]), bo=row(params["bo"]),
        ln1_g=row(params["ln1_g"]), ln1_b=row(params["ln1_b"]),
        w1=t(params["w1"]), b1=row(params["b1"]),
        w2=t(params["w2"]), b2=row(params["b2"]),
        ln2_g=row(params["ln2_g"]), ln2_b=row(params["ln2_b"]),
    )


def _pick_batch_block(B, cap=8):
    """Largest divisor of B that is <= cap (amortizes per-layer weight DMA)."""
    for bt in range(min(B, cap), 0, -1):
        if B % bt == 0:
            return bt
    return 1


# ----------------------------------------------------------------------------
# wrapper
# ----------------------------------------------------------------------------
def encoder_forward(token_ids, params, *, num_heads,
                    improved=DO_IMPROVED_SELF_ATTENTION, batch_block=None):
    x0 = _embed(token_ids, params).astype(jnp.float32)   # plain-JAX embedding gather
    B, S, H = x0.shape
    assert H % num_heads == 0
    hd = H // num_heads
    kp = _prep_layer_params(params)
    L = kp["wqkv"].shape[0]

    Bt = batch_block if batch_block is not None else _pick_batch_block(B)
    assert B % Bt == 0

    kernel = partial(_encoder_layer_kernel, num_heads=num_heads,
                     inv_scale=1.0 / math.sqrt(hd), eps=1e-5, improved=improved)

    per_batch = lambda b, l: (b, 0, 0)     # batch-block resident across layers
    per_layer = lambda b, l: (l, 0, 0)     # per-layer weight streams

    row_spec = pl.BlockSpec((1, 1, H), per_layer)
    hh_spec = pl.BlockSpec((1, H, H), per_layer)

    in_specs = [
        pl.BlockSpec((Bt, S, H), per_batch),             # embedded input block
        pl.BlockSpec((1, H, 3 * H), per_layer),          # fused Wqkv^T
        pl.BlockSpec((1, 1, 3 * H), per_layer),          # fused bqkv (lane-dense)
        hh_spec, row_spec,                               # Wo^T, bo
        row_spec, row_spec,                              # LayerNorm1 gamma, beta
        hh_spec, row_spec,                               # W1^T, b1
        hh_spec, row_spec,                               # W2^T, b2
        row_spec, row_spec,                              # LayerNorm2 gamma, beta
    ]

    return pl.pallas_call(
        kernel,
        out_shape=jax.ShapeDtypeStruct((B, S, H), jnp.float32),
        grid=(B // Bt, L),
        in_specs=in_specs,
        # Output block index depends only on the batch axis -> it stays
        # resident in VMEM across the layer axis and is the residual carry.
        out_specs=pl.BlockSpec((Bt, S, H), per_batch),
        compiler_params=pltpu.CompilerParams(
            # batch-block axis independent -> "parallel" (megacore);
            # layer axis carries state in the resident output block ->
            # MUST remain innermost and "arbitrary" (sequential).
            dimension_semantics=("parallel", "arbitrary")),
    )(x0,
      kp["wqkv"], kp["bqkv"], kp["wo"], kp["bo"],
      kp["ln1_g"], kp["ln1_b"],
      kp["w1"], kp["b1"], kp["w2"], kp["b2"],
      kp["ln2_g"], kp["ln2_b"])


# ----------------------------------------------------------------------------
# plain-JAX reference mirroring the PyTorch forward.  It applies the same
# bf16 casts at the matmul operands as the kernel (f32 accumulation) so the
# comparison stays tight while validating the full structure.
# ----------------------------------------------------------------------------
def _reference(token_ids, params, *, num_heads, improved):
    f32 = jnp.float32
    cast = lambda a: a.astype(jnp.bfloat16)
    x = _embed(token_ids, params)
    B, S, H = x.shape
    hd = H // num_heads
    L = params["wq"].shape[0]

    def linear(t, w, b):                                 # t @ W^T + b
        return jnp.einsum('bsk,fk->bsf', cast(t), cast(w),
                          preferred_element_type=f32) + b

    for l in range(L):
        a_in = _layer_norm(x, params["ln1_g"][l], params["ln1_b"][l], 1e-5) \
            if improved else x
        Q = linear(a_in, params["wq"][l], params["bq"][l])
        K = linear(a_in, params["wk"][l], params["bk"][l])
        V = linear(a_in, params["wv"][l], params["bv"][l])
        split = lambda t: t.reshape(B, S, num_heads, hd).transpose(0, 2, 1, 3)
        Qh, Kh, Vh = split(Q), split(K), split(V)
        energy = jnp.einsum('bhqd,bhkd->bhqk', cast(Qh), cast(Kh),
                            preferred_element_type=f32) / math.sqrt(hd)
        attn = jax.nn.softmax(energy, axis=-1)
        ctx = jnp.einsum('bhqk,bhkd->bhqd', cast(attn), cast(Vh),
                         preferred_element_type=f32)
        ctx = ctx.transpose(0, 2, 1, 3).reshape(B, S, H)
        attn_out = linear(ctx, params["wo"][l], params["bo"][l])
        if improved:
            x = x + attn_out
        else:
            x = _layer_norm(x + attn_out, params["ln1_g"][l], params["ln1_b"][l], 1e-5)
        h1 = jax.nn.relu(linear(x, params["w1"][l], params["b1"][l]))
        h2 = linear(h1, params["w2"][l], params["b2"][l])
        x = _layer_norm(x + h2, params["ln2_g"][l], params["ln2_b"][l], 1e-5)
    return x


# ----------------------------------------------------------------------------
# deterministic parameter init (PyTorch-like uniform bounds)
# ----------------------------------------------------------------------------
def _init_params(key, *, vocab, max_len, hidden, num_layers):
    H, L = hidden, num_layers
    ks = jax.random.split(key, 9)
    bound = 1.0 / math.sqrt(H)

    def linear_init(k):
        kw, kb = jax.random.split(k)
        w = jax.random.uniform(kw, (L, H, H), jnp.float32, -bound, bound)
        b = jax.random.uniform(kb, (L, H), jnp.float32, -bound, bound)
        return w, b

    wq, bq = linear_init(ks[0]); wk, bk = linear_init(ks[1])
    wv, bv = linear_init(ks[2]); wo, bo = linear_init(ks[3])
    w1, b1 = linear_init(ks[4]); w2, b2 = linear_init(ks[5])

    tok_emb = jax.random.normal(ks[6], (vocab, H), jnp.float32)
    pos_emb = jax.random.normal(ks[7], (max_len, H), jnp.float32)

    kg = jax.random.split(ks[8], 4)
    ln1_g = 1.0 + 0.1 * jax.random.normal(kg[0], (L, H), jnp.float32)
    ln1_b = 0.1 * jax.random.normal(kg[1], (L, H), jnp.float32)
    ln2_g = 1.0 + 0.1 * jax.random.normal(kg[2], (L, H), jnp.float32)
    ln2_b = 0.1 * jax.random.normal(kg[3], (L, H), jnp.float32)

    return dict(tok_emb=tok_emb, pos_emb=pos_emb,
                wq=wq, bq=bq, wk=wk, bk=bk, wv=wv, bv=bv, wo=wo, bo=bo,
                ln1_g=ln1_g, ln1_b=ln1_b, ln2_g=ln2_g, ln2_b=ln2_b,
                w1=w1, b1=b1, w2=w2, b2=b2)


if __name__ == "__main__":
    B, S = 2, 8          # batch, sequence length
    H = 32               # hidden dim
    NUM_HEADS = 4
    NUM_LAYERS = 2
    VOCAB = 50           # input_dim (vocabulary size)
    MAX_LEN = 256

    k_params, k_ids = jax.random.split(jax.random.PRNGKey(0))
    params = _init_params(k_params, vocab=VOCAB, max_len=MAX_LEN,
                          hidden=H, num_layers=NUM_LAYERS)
    token_ids = jax.random.randint(k_ids, (B, S), 0, VOCAB, dtype=jnp.int32)

    for improved in (False, True):
        out = encoder_forward(token_ids, params, num_heads=NUM_HEADS,
                              improved=improved)
        jax.block_until_ready(out)
        ref = _reference(token_ids, params, num_heads=NUM_HEADS,
                         improved=improved)
        assert out.shape == (B, S, H)
        assert bool(jnp.all(jnp.isfinite(out)))
        # bf16 MXU matmuls (f32 accumulation) + approx reciprocal in softmax
        # -> tolerance relaxed vs pure-f32.
        assert jnp.allclose(out, ref, atol=2e-2, rtol=2e-2), (
            f"mismatch (improved={improved}): "
            f"max abs err {float(jnp.max(jnp.abs(out - ref)))}")

    print("KERNEL_OK")
</pallas_src>

<mosaic_0001>
module attributes {stable_mosaic.version = 11 : i64} {
  func.func @_encoder_layer_kernel(%arg0: i32, %arg1: i32, %arg2: memref<2x8x32xf32, #tpu.memory_space<vmem>>, %arg3: memref<1x32x96xbf16, #tpu.memory_space<vmem>>, %arg4: memref<1x1x96xf32, #tpu.memory_space<vmem>>, %arg5: memref<1x32x32xbf16, #tpu.memory_space<vmem>>, %arg6: memref<1x1x32xf32, #tpu.memory_space<vmem>>, %arg7: memref<1x1x32xf32, #tpu.memory_space<vmem>>, %arg8: memref<1x1x32xf32, #tpu.memory_space<vmem>>, %arg9: memref<1x32x32xbf16, #tpu.memory_space<vmem>>, %arg10: memref<1x1x32xf32, #tpu.memory_space<vmem>>, %arg11: memref<1x32x32xbf16, #tpu.memory_space<vmem>>, %arg12: memref<1x1x32xf32, #tpu.memory_space<vmem>>, %arg13: memref<1x1x32xf32, #tpu.memory_space<vmem>>, %arg14: memref<1x1x32xf32, #tpu.memory_space<vmem>>, %arg15: memref<2x8x32xf32, #tpu.memory_space<vmem>>) attributes {dimension_semantics = [#tpu.dimension_semantics<parallel>, #tpu.dimension_semantics<arbitrary>], iteration_bounds = array<i64: 1, 2>, scalar_prefetch = 0 : i64, scratch_operands = 0 : i64, tpu.core_type = #tpu.core_type<tc>, window_params = [{transform_indices = @transform_0, window_bounds = array<i64: 2, 8, 32>}, {transform_indices = @transform_1, window_bounds = array<i64: 1, 32, 96>}, {transform_indices = @transform_2, window_bounds = array<i64: 1, 1, 96>}, {transform_indices = @transform_3, window_bounds = array<i64: 1, 32, 32>}, {transform_indices = @transform_4, window_bounds = array<i64: 1, 1, 32>}, {transform_indices = @transform_5, window_bounds = array<i64: 1, 1, 32>}, {transform_indices = @transform_6, window_bounds = array<i64: 1, 1, 32>}, {transform_indices = @transform_7, window_bounds = array<i64: 1, 32, 32>}, {transform_indices = @transform_8, window_bounds = array<i64: 1, 1, 32>}, {transform_indices = @transform_9, window_bounds = array<i64: 1, 32, 32>}, {transform_indices = @transform_10, window_bounds = array<i64: 1, 1, 32>}, {transform_indices = @transform_11, window_bounds = array<i64: 1, 1, 32>}, {transform_indices = @transform_12, window_bounds = array<i64: 1, 1, 32>}, {transform_indices = @transform_13, window_bounds = array<i64: 2, 8, 32>}]} {
    %c0_i32 = arith.constant 0 : i32
    %0 = arith.cmpi eq, %arg1, %c0_i32 : i32
    %1 = arith.extui %0 : i1 to i32
    %c0_i32_0 = arith.constant 0 : i32
    %2 = arith.cmpi ne, %1, %c0_i32_0 : i32
    scf.if %2 {
      %c0_66 = arith.constant 0 : index
      %c0_67 = arith.constant 0 : index
      %c0_68 = arith.constant 0 : index
      %162 = vector.load %arg2[%c0_66, %c0_67, %c0_68] : memref<2x8x32xf32, #tpu.memory_space<vmem>>, vector<2x8x32xf32>
      %c0_69 = arith.constant 0 : index
      %c0_70 = arith.constant 0 : index
      %c0_71 = arith.constant 0 : index
      %163 = vector.load %arg15[%c0_69, %c0_70, %c0_71] : memref<2x8x32xf32, #tpu.memory_space<vmem>>, vector<2x8x32xf32>
      tpu.vector_store %arg15[%c0_69, %c0_70, %c0_71], %162 {strides = array<i32>} : memref<2x8x32xf32, #tpu.memory_space<vmem>>, vector<2x8x32xf32>,
    } else {
    }
    %c0 = arith.constant 0 : index
    %c0_1 = arith.constant 0 : index
    %c0_2 = arith.constant 0 : index
    %3 = vector.load %arg15[%c0, %c0_1, %c0_2] : memref<2x8x32xf32, #tpu.memory_space<vmem>>, vector<2x8x32xf32>
    %4 = vector.shape_cast %3 : vector<2x8x32xf32> to vector<16x32xf32>
    %5 = arith.truncf %4 : vector<16x32xf32> to vector<16x32xbf16>
    %c0_3 = arith.constant 0 : index
    %c0_4 = arith.constant 0 : index
    %c0_5 = arith.constant 0 : index
    %6 = vector.load %arg3[%c0_3, %c0_4, %c0_5] : memref<1x32x96xbf16, #tpu.memory_space<vmem>>, vector<1x32x96xbf16>
    %7 = vector.shape_cast %6 : vector<1x32x96xbf16> to vector<32x96xbf16>
    %cst = arith.constant dense<0.000000e+00> : vector<16x96xf32>
    %8 = tpu.matmul %5, %7, %cst {dimension_numbers = #tpu.dot_dimension_numbers<[1], [0], [0], [1], [0, 0, 1, 1], [], []>} : vector<16x32xbf16>, vector<32x96xbf16>, vector<16x96xf32> -> vector<16x96xf32>
    %c0_6 = arith.constant 0 : index
    %c0_7 = arith.constant 0 : index
    %c0_8 = arith.constant 0 : index
    %9 = vector.load %arg4[%c0_6, %c0_7, %c0_8] : memref<1x1x96xf32, #tpu.memory_space<vmem>>, vector<1x1x96xf32>
    %10 = vector.shape_cast %9 : vector<1x1x96xf32> to vector<1x96xf32>
    %11 = vector.broadcast %10 : vector<1x96xf32> to vector<16x96xf32>
    %12 = arith.addf %8, %11 : vector<16x96xf32>
    %13 = vector.extract_strided_slice %12 {offsets = [0, 0], sizes = [8, 96], strides = [1, 1]} : vector<16x96xf32> to vector<8x96xf32>
    %14 = vector.extract_strided_slice %13 {offsets = [0, 0], sizes = [8, 32], strides = [1, 1]} : vector<8x96xf32> to vector<8x32xf32>
    %15 = vector.shape_cast %14 : vector<8x32xf32> to vector<8x4x8xf32>
    %16 = tpu.transpose %15, [1, 0, 2] : vector<8x4x8xf32> -> vector<4x8x8xf32>
    %17 = arith.truncf %16 : vector<4x8x8xf32> to vector<4x8x8xbf16>
    %18 = vector.extract_strided_slice %13 {offsets = [0, 32], sizes = [8, 32], strides = [1, 1]} : vector<8x96xf32> to vector<8x32xf32>
    %19 = vector.shape_cast %18 : vector<8x32xf32> to vector<8x4x8xf32>
    %20 = tpu.transpose %19, [1, 0, 2] : vector<8x4x8xf32> -> vector<4x8x8xf32>
    %21 = arith.truncf %20 : vector<4x8x8xf32> to vector<4x8x8xbf16>
    %22 = vector.extract_strided_slice %13 {offsets = [0, 64], sizes = [8, 32], strides = [1, 1]} : vector<8x96xf32> to vector<8x32xf32>
    %23 = vector.shape_cast %22 : vector<8x32xf32> to vector<8x4x8xf32>
    %24 = tpu.transpose %23, [1, 0, 2] : vector<8x4x8xf32> -> vector<4x8x8xf32>
    %25 = arith.truncf %24 : vector<4x8x8xf32> to vector<4x8x8xbf16>
    "tpu.trace_start"() <{level = 10 : i32, message = "hqd,hkd->hqk"}> : () -> ()
    %cst_9 = arith.constant dense<0.000000e+00> : vector<4x8x8xf32>
    %26 = tpu.matmul %17, %21, %cst_9 {dimension_numbers = #tpu.dot_dimension_numbers<[2], [2], [1], [1], [0, 0, 0, 1, 1, 1], [0], [0]>} : vector<4x8x8xbf16>, vector<4x8x8xbf16>, vector<4x8x8xf32> -> vector<4x8x8xf32>
    "tpu.trace_stop"() : () -> ()
    %cst_10 = arith.constant 0.353553385 : f32
    %27 = vector.broadcast %cst_10 : f32 to vector<4x8x8xf32>
    %28 = arith.mulf %26, %27 : vector<4x8x8xf32>
    %cst_11 = arith.constant dense<0xFF800000> : vector<4x8xf32>
    %29 = vector.multi_reduction <maximumf>, %28, %cst_11 [2] : vector<4x8x8xf32> to vector<4x8xf32>
    %30 = vector.shape_cast %29 : vector<4x8xf32> to vector<4x8x1xf32>
    %31 = vector.broadcast %30 : vector<4x8x1xf32> to vector<4x8x8xf32>
    %32 = arith.subf %28, %31 : vector<4x8x8xf32>
    %33 = math.exp %32 : vector<4x8x8xf32>
    %cst_12 = arith.constant dense<0.000000e+00> : vector<4x8xf32>
    %34 = vector.multi_reduction <add>, %33, %cst_12 [2] : vector<4x8x8xf32> to vector<4x8xf32>
    %35 = vector.shape_cast %34 : vector<4x8xf32> to vector<4x8x1xf32>
    %36 = tpu.reciprocal %35 {approx = true} : vector<4x8x1xf32> -> vector<4x8x1xf32>
    %37 = vector.broadcast %36 : vector<4x8x1xf32> to vector<4x8x8xf32>
    %38 = arith.mulf %33, %37 : vector<4x8x8xf32>
    %39 = arith.truncf %38 : vector<4x8x8xf32> to vector<4x8x8xbf16>
    "tpu.trace_start"() <{level = 10 : i32, message = "hqk,hkd->hqd"}> : () -> ()
    %cst_13 = arith.constant dense<0.000000e+00> : vector<4x8x8xf32>
    %40 = tpu.matmul %39, %25, %cst_13 {dimension_numbers = #tpu.dot_dimension_numbers<[2], [1], [1], [2], [0, 0, 0, 1, 1, 2], [0], [0]>} : vector<4x8x8xbf16>, vector<4x8x8xbf16>, vector<4x8x8xf32> -> vector<4x8x8xf32>
    "tpu.trace_stop"() : () -> ()
    %41 = tpu.transpose %40, [1, 0, 2] : vector<4x8x8xf32> -> vector<8x4x8xf32>
    %42 = vector.shape_cast %41 : vector<8x4x8xf32> to vector<8x32xf32>
    %43 = vector.extract_strided_slice %12 {offsets = [8, 0], sizes = [8, 96], strides = [1, 1]} : vector<16x96xf32> to vector<8x96xf32>
    %44 = vector.extract_strided_slice %43 {offsets = [0, 0], sizes = [8, 32], strides = [1, 1]} : vector<8x96xf32> to vector<8x32xf32>
    %45 = vector.shape_cast %44 : vector<8x32xf32> to vector<8x4x8xf32>
    %46 = tpu.transpose %45, [1, 0, 2] : vector<8x4x8xf32> -> vector<4x8x8xf32>
    %47 = arith.truncf %46 : vector<4x8x8xf32> to vector<4x8x8xbf16>
    %48 = vector.extract_strided_slice %43 {offsets = [0, 32], sizes = [8, 32], strides = [1, 1]} : vector<8x96xf32> to vector<8x32xf32>
    %49 = vector.shape_cast %48 : vector<8x32xf32> to vector<8x4x8xf32>
    %50 = tpu.transpose %49, [1, 0, 2] : vector<8x4x8xf32> -> vector<4x8x8xf32>
    %51 = arith.truncf %50 : vector<4x8x8xf32> to vector<4x8x8xbf16>
    %52 = vector.extract_strided_slice %43 {offsets = [0, 64], sizes = [8, 32], strides = [1, 1]} : vector<8x96xf32> to vector<8x32xf32>
    %53 = vector.shape_cast %52 : vector<8x32xf32> to vector<8x4x8xf32>
    %54 = tpu.transpose %53, [1, 0, 2] : vector<8x4x8xf32> -> vector<4x8x8xf32>
    %55 = arith.truncf %54 : vector<4x8x8xf32> to vector<4x8x8xbf16>
    "tpu.trace_start"() <{level = 10 : i32, message = "hqd,hkd->hqk"}> : () -> ()
    %cst_14 = arith.constant dense<0.000000e+00> : vector<4x8x8xf32>
    %56 = tpu.matmul %47, %51, %cst_14 {dimension_numbers = #tpu.dot_dimension_numbers<[2], [2], [1], [1], [0, 0, 0, 1, 1, 1], [0], [0]>} : vector<4x8x8xbf16>, vector<4x8x8xbf16>, vector<4x8x8xf32> -> vector<4x8x8xf32>
    "tpu.trace_stop"() : () -> ()
    %cst_15 = arith.constant 0.353553385 : f32
    %57 = vector.broadcast %cst_15 : f32 to vector<4x8x8xf32>
    %58 = arith.mulf %56, %57 : vector<4x8x8xf32>
    %cst_16 = arith.constant dense<0xFF800000> : vector<4x8xf32>
    %59 = vector.multi_reduction <maximumf>, %58, %cst_16 [2] : vector<4x8x8xf32> to vector<4x8xf32>
    %60 = vector.shape_cast %59 : vector<4x8xf32> to vector<4x8x1xf32>
    %61 = vector.broadcast %60 : vector<4x8x1xf32> to vector<4x8x8xf32>
    %62 = arith.subf %58, %61 : vector<4x8x8xf32>
    %63 = math.exp %62 : vector<4x8x8xf32>
    %cst_17 = arith.constant dense<0.000000e+00> : vector<4x8xf32>
    %64 = vector.multi_reduction <add>, %63, %cst_17 [2] : vector<4x8x8xf32> to vector<4x8xf32>
    %65 = vector.shape_cast %64 : vector<4x8xf32> to vector<4x8x1xf32>
    %66 = tpu.reciprocal %65 {approx = true} : vector<4x8x1xf32> -> vector<4x8x1xf32>
    %67 = vector.broadcast %66 : vector<4x8x1xf32> to vector<4x8x8xf32>
    %68 = arith.mulf %63, %67 : vector<4x8x8xf32>
    %69 = arith.truncf %68 : vector<4x8x8xf32> to vector<4x8x8xbf16>
    "tpu.trace_start"() <{level = 10 : i32, message = "hqk,hkd->hqd"}> : () -> ()
    %cst_18 = arith.constant dense<0.000000e+00> : vector<4x8x8xf32>
    %70 = tpu.matmul %69, %55, %cst_18 {dimension_numbers = #tpu.dot_dimension_numbers<[2], [1], [1], [2], [0, 0, 0, 1, 1, 2], [0], [0]>} : vector<4x8x8xbf16>, vector<4x8x8xbf16>, vector<4x8x8xf32> -> vector<4x8x8xf32>
    "tpu.trace_stop"() : () -> ()
    %71 = tpu.transpose %70, [1, 0, 2] : vector<4x8x8xf32> -> vector<8x4x8xf32>
    %72 = vector.shape_cast %71 : vector<8x4x8xf32> to vector<8x32xf32>
    %73 = tpu.concatenate %42, %72 in 0 : vector<8x32xf32>, vector<8x32xf32> -> vector<16x32xf32>
    %74 = arith.truncf %73 : vector<16x32xf32> to vector<16x32xbf16>
    %c0_19 = arith.constant 0 : index
    %c0_20 = arith.constant 0 : index
    %c0_21 = arith.constant 0 : index
    %75 = vector.load %arg5[%c0_19, %c0_20, %c0_21] : memref<1x32x32xbf16, #tpu.memory_space<vmem>>, vector<1x32x32xbf16>
    %76 = vector.shape_cast %75 : vector<1x32x32xbf16> to vector<32x32xbf16>
    %cst_22 = arith.constant dense<0.000000e+00> : vector<16x32xf32>
    %77 = tpu.matmul %74, %76, %cst_22 {dimension_numbers = #tpu.dot_dimension_numbers<[1], [0], [0], [1], [0, 0, 1, 1], [], []>} : vector<16x32xbf16>, vector<32x32xbf16>, vector<16x32xf32> -> vector<16x32xf32>
    %c0_23 = arith.constant 0 : index
    %c0_24 = arith.constant 0 : index
    %c0_25 = arith.constant 0 : index
    %78 = vector.load %arg6[%c0_23, %c0_24, %c0_25] : memref<1x1x32xf32, #tpu.memory_space<vmem>>, vector<1x1x32xf32>
    %79 = vector.shape_cast %78 : vector<1x1x32xf32> to vector<1x32xf32>
    %80 = vector.broadcast %79 : vector<1x32xf32> to vector<16x32xf32>
    %81 = arith.addf %77, %80 : vector<16x32xf32>
    %82 = vector.shape_cast %81 : vector<16x32xf32> to vector<2x8x32xf32>
    %83 = arith.addf %3, %82 : vector<2x8x32xf32>
    %c0_26 = arith.constant 0 : index
    %c0_27 = arith.constant 0 : index
    %c0_28 = arith.constant 0 : index
    %84 = vector.load %arg7[%c0_26, %c0_27, %c0_28] : memref<1x1x32xf32, #tpu.memory_space<vmem>>, vector<1x1x32xf32>
    %85 = vector.shape_cast %84 : vector<1x1x32xf32> to vector<1x32xf32>
    %c0_29 = arith.constant 0 : index
    %c0_30 = arith.constant 0 : index
    %c0_31 = arith.constant 0 : index
    %86 = vector.load %arg8[%c0_29, %c0_30, %c0_31] : memref<1x1x32xf32, #tpu.memory_space<vmem>>, vector<1x1x32xf32>
    %87 = vector.shape_cast %86 : vector<1x1x32xf32> to vector<1x32xf32>
    %cst_32 = arith.constant dense<0.000000e+00> : vector<2x8xf32>
    %88 = vector.multi_reduction <add>, %83, %cst_32 [2] : vector<2x8x32xf32> to vector<2x8xf32>
    %89 = vector.shape_cast %88 : vector<2x8xf32> to vector<2x8x1xf32>
    %cst_33 = arith.constant 3.200000e+01 : f32
    %90 = vector.broadcast %cst_33 : f32 to vector<2x8x1xf32>
    %91 = arith.divf %89, %90 : vector<2x8x1xf32>
    %92 = vector.broadcast %91 : vector<2x8x1xf32> to vector<2x8x32xf32>
    %93 = arith.subf %83, %92 : vector<2x8x32xf32>
    %94 = arith.mulf %93, %93 : vector<2x8x32xf32>
    %cst_34 = arith.constant dense<0.000000e+00> : vector<2x8xf32>
    %95 = vector.multi_reduction <add>, %94, %cst_34 [2] : vector<2x8x32xf32> to vector<2x8xf32>
    %96 = vector.shape_cast %95 : vector<2x8xf32> to vector<2x8x1xf32>
    %cst_35 = arith.constant 3.200000e+01 : f32
    %97 = vector.broadcast %cst_35 : f32 to vector<2x8x1xf32>
    %98 = arith.divf %96, %97 : vector<2x8x1xf32>
    %99 = vector.broadcast %91 : vector<2x8x1xf32> to vector<2x8x32xf32>
    %100 = arith.subf %83, %99 : vector<2x8x32xf32>
    %cst_36 = arith.constant 9.99999974E-6 : f32
    %101 = vector.broadcast %cst_36 : f32 to vector<2x8x1xf32>
    %102 = arith.addf %98, %101 : vector<2x8x1xf32>
    %103 = math.rsqrt %102 : vector<2x8x1xf32>
    %104 = vector.broadcast %103 : vector<2x8x1xf32> to vector<2x8x32xf32>
    %105 = arith.mulf %100, %104 : vector<2x8x32xf32>
    %106 = vector.shape_cast %85 : vector<1x32xf32> to vector<1x1x32xf32>
    %107 = vector.broadcast %106 : vector<1x1x32xf32> to vector<2x8x32xf32>
    %108 = arith.mulf %105, %107 : vector<2x8x32xf32>
    %109 = vector.shape_cast %87 : vector<1x32xf32> to vector<1x1x32xf32>
    %110 = vector.broadcast %109 : vector<1x1x32xf32> to vector<2x8x32xf32>
    %111 = arith.addf %108, %110 : vector<2x8x32xf32>
    %112 = vector.shape_cast %111 : vector<2x8x32xf32> to vector<16x32xf32>
    %113 = arith.truncf %112 : vector<16x32xf32> to vector<16x32xbf16>
    %c0_37 = arith.constant 0 : index
    %c0_38 = arith.constant 0 : index
    %c0_39 = arith.constant 0 : index
    %114 = vector.load %arg9[%c0_37, %c0_38, %c0_39] : memref<1x32x32xbf16, #tpu.memory_space<vmem>>, vector<1x32x32xbf16>
    %115 = vector.shape_cast %114 : vector<1x32x32xbf16> to vector<32x32xbf16>
    %cst_40 = arith.constant dense<0.000000e+00> : vector<16x32xf32>
    %116 = tpu.matmul %113, %115, %cst_40 {dimension_numbers = #tpu.dot_dimension_numbers<[1], [0], [0], [1], [0, 0, 1, 1], [], []>} : vector<16x32xbf16>, vector<32x32xbf16>, vector<16x32xf32> -> vector<16x32xf32>
    %c0_41 = arith.constant 0 : index
    %c0_42 = arith.constant 0 : index
    %c0_43 = arith.constant 0 : index
    %117 = vector.load %arg10[%c0_41, %c0_42, %c0_43] : memref<1x1x32xf32, #tpu.memory_space<vmem>>, vector<1x1x32xf32>
    %118 = vector.shape_cast %117 : vector<1x1x32xf32> to vector<1x32xf32>
    %119 = vector.broadcast %118 : vector<1x32xf32> to vector<16x32xf32>
    %120 = arith.addf %116, %119 : vector<16x32xf32>
    %cst_44 = arith.constant 0.000000e+00 : f32
    %121 = vector.broadcast %cst_44 : f32 to vector<16x32xf32>
    %122 = arith.maximumf %120, %121 : vector<16x32xf32>
    %123 = arith.truncf %122 : vector<16x32xf32> to vector<16x32xbf16>
    %c0_45 = arith.constant 0 : index
    %c0_46 = arith.constant 0 : index
    %c0_47 = arith.constant 0 : index
    %124 = vector.load %arg11[%c0_45, %c0_46, %c0_47] : memref<1x32x32xbf16, #tpu.memory_space<vmem>>, vector<1x32x32xbf16>
    %125 = vector.shape_cast %124 : vector<1x32x32xbf16> to vector<32x32xbf16>
    %cst_48 = arith.constant dense<0.000000e+00> : vector<16x32xf32>
    %126 = tpu.matmul %123, %125, %cst_48 {dimension_numbers = #tpu.dot_dimension_numbers<[1], [0], [0], [1], [0, 0, 1, 1], [], []>} : vector<16x32xbf16>, vector<32x32xbf16>, vector<16x32xf32> -> vector<16x32xf32>
    %c0_49 = arith.constant 0 : index
    %c0_50 = arith.constant 0 : index
    %c0_51 = arith.constant 0 : index
    %127 = vector.load %arg12[%c0_49, %c0_50, %c0_51] : memref<1x1x32xf32, #tpu.memory_space<vmem>>, vector<1x1x32xf32>
    %128 = vector.shape_cast %127 : vector<1x1x32xf32> to vector<1x32xf32>
    %129 = vector.broadcast %128 : vector<1x32xf32> to vector<16x32xf32>
    %130 = arith.addf %126, %129 : vector<16x32xf32>
    %131 = vector.shape_cast %130 : vector<16x32xf32> to vector<2x8x32xf32>
    %132 = arith.addf %111, %131 : vector<2x8x32xf32>
    %c0_52 = arith.constant 0 : index
    %c0_53 = arith.constant 0 : index
    %c0_54 = arith.constant 0 : index
    %133 = vector.load %arg13[%c0_52, %c0_53, %c0_54] : memref<1x1x32xf32, #tpu.memory_space<vmem>>, vector<1x1x32xf32>
    %134 = vector.shape_cast %133 : vector<1x1x32xf32> to vector<1x32xf32>
    %c0_55 = arith.constant 0 : index
    %c0_56 = arith.constant 0 : index
    %c0_57 = arith.constant 0 : index
    %135 = vector.load %arg14[%c0_55, %c0_56, %c0_57] : memref<1x1x32xf32, #tpu.memory_space<vmem>>, vector<1x1x32xf32>
    %136 = vector.shape_cast %135 : vector<1x1x32xf32> to vector<1x32xf32>
    %cst_58 = arith.constant dense<0.000000e+00> : vector<2x8xf32>
    %137 = vector.multi_reduction <add>, %132, %cst_58 [2] : vector<2x8x32xf32> to vector<2x8xf32>
    %138 = vector.shape_cast %137 : vector<2x8xf32> to vector<2x8x1xf32>
    %cst_59 = arith.constant 3.200000e+01 : f32
    %139 = vector.broadcast %cst_59 : f32 to vector<2x8x1xf32>
    %140 = arith.divf %138, %139 : vector<2x8x1xf32>
    %141 = vector.broadcast %140 : vector<2x8x1xf32> to vector<2x8x32xf32>
    %142 = arith.subf %132, %141 : vector<2x8x32xf32>
    %143 = arith.mulf %142, %142 : vector<2x8x32xf32>
    %cst_60 = arith.constant dense<0.000000e+00> : vector<2x8xf32>
    %144 = vector.multi_reduction <add>, %143, %cst_60 [2] : vector<2x8x32xf32> to vector<2x8xf32>
    %145 = vector.shape_cast %144 : vector<2x8xf32> to vector<2x8x1xf32>
    %cst_61 = arith.constant 3.200000e+01 : f32
    %146 = vector.broadcast %cst_61 : f32 to vector<2x8x1xf32>
    %147 = arith.divf %145, %146 : vector<2x8x1xf32>
    %148 = vector.broadcast %140 : vector<2x8x1xf32> to vector<2x8x32xf32>
    %149 = arith.subf %132, %148 : vector<2x8x32xf32>
    %cst_62 = arith.constant 9.99999974E-6 : f32
    %150 = vector.broadcast %cst_62 : f32 to vector<2x8x1xf32>
    %151 = arith.addf %147, %150 : vector<2x8x1xf32>
    %152 = math.rsqrt %151 : vector<2x8x1xf32>
    %153 = vector.broadcast %152 : vector<2x8x1xf32> to vector<2x8x32xf32>
    %154 = arith.mulf %149, %153 : vector<2x8x32xf32>
    %155 = vector.shape_cast %134 : vector<1x32xf32> to vector<1x1x32xf32>
    %156 = vector.broadcast %155 : vector<1x1x32xf32> to vector<2x8x32xf32>
    %157 = arith.mulf %154, %156 : vector<2x8x32xf32>
    %158 = vector.shape_cast %136 : vector<1x32xf32> to vector<1x1x32xf32>
    %159 = vector.broadcast %158 : vector<1x1x32xf32> to vector<2x8x32xf32>
    %160 = arith.addf %157, %159 : vector<2x8x32xf32>
    %c0_63 = arith.constant 0 : index
    %c0_64 = arith.constant 0 : index
    %c0_65 = arith.constant 0 : index
    %161 = vector.load %arg15[%c0_63, %c0_64, %c0_65] : memref<2x8x32xf32, #tpu.memory_space<vmem>>, vector<2x8x32xf32>
    tpu.vector_store %arg15[%c0_63, %c0_64, %c0_65], %160 {strides = array<i32>} : memref<2x8x32xf32, #tpu.memory_space<vmem>>, vector<2x8x32xf32>,
    return
  }
  func.func @transform_0(%arg0: i32, %arg1: i32) -> (i32, i32, i32) {
    %c0_i32 = arith.constant 0 : i32
    %c0_i32_0 = arith.constant 0 : i32
    %c0_i32_1 = arith.constant 0 : i32
    return %arg0, %c0_i32, %c0_i32_0 : i32, i32, i32
  }
  func.func @transform_1(%arg0: i32, %arg1: i32) -> (i32, i32, i32) {
    %c0_i32 = arith.constant 0 : i32
    %c0_i32_0 = arith.constant 0 : i32
    %c0_i32_1 = arith.constant 0 : i32
    return %arg1, %c0_i32, %c0_i32_0 : i32, i32, i32
  }
  func.func @transform_2(%arg0: i32, %arg1: i32) -> (i32, i32, i32) {
    %c0_i32 = arith.constant 0 : i32
    %c0_i32_0 = arith.constant 0 : i32
    %c0_i32_1 = arith.constant 0 : i32
    return %arg1, %c0_i32, %c0_i32_0 : i32, i32, i32
  }
  func.func @transform_3(%arg0: i32, %arg1: i32) -> (i32, i32, i32) {
    %c0_i32 = arith.constant 0 : i32
    %c0_i32_0 = arith.constant 0 : i32
    %c0_i32_1 = arith.constant 0 : i32
    return %arg1, %c0_i32, %c0_i32_0 : i32, i32, i32
  }
  func.func @transform_4(%arg0: i32, %arg1: i32) -> (i32, i32, i32) {
    %c0_i32 = arith.constant 0 : i32
    %c0_i32_0 = arith.constant 0 : i32
    %c0_i32_1 = arith.constant 0 : i32
    return %arg1, %c0_i32, %c0_i32_0 : i32, i32, i32
  }
  func.func @transform_5(%arg0: i32, %arg1: i32) -> (i32, i32, i32) {
    %c0_i32 = arith.constant 0 : i32
    %c0_i32_0 = arith.constant 0 : i32
    %c0_i32_1 = arith.constant 0 : i32
    return %arg1, %c0_i32, %c0_i32_0 : i32, i32, i32
  }
  func.func @transform_6(%arg0: i32, %arg1: i32) -> (i32, i32, i32) {
    %c0_i32 = arith.constant 0 : i32
    %c0_i32_0 = arith.constant 0 : i32
    %c0_i32_1 = arith.constant 0 : i32
    return %arg1, %c0_i32, %c0_i32_0 : i32, i32, i32
  }
  func.func @transform_7(%arg0: i32, %arg1: i32) -> (i32, i32, i32) {
    %c0_i32 = arith.constant 0 : i32
    %c0_i32_0 = arith.constant 0 : i32
    %c0_i32_1 = arith.constant 0 : i32
    return %arg1, %c0_i32, %c0_i32_0 : i32, i32, i32
  }
  func.func @transform_8(%arg0: i32, %arg1: i32) -> (i32, i32, i32) {
    %c0_i32 = arith.constant 0 : i32
    %c0_i32_0 = arith.constant 0 : i32
    %c0_i32_1 = arith.constant 0 : i32
    return %arg1, %c0_i32, %c0_i32_0 : i32, i32, i32
  }
  func.func @transform_9(%arg0: i32, %arg1: i32) -> (i32, i32, i32) {
    %c0_i32 = arith.constant 0 : i32
    %c0_i32_0 = arith.constant 0 : i32
    %c0_i32_1 = arith.constant 0 : i32
    return %arg1, %c0_i32, %c0_i32_0 : i32, i32, i32
  }
  func.func @transform_10(%arg0: i32, %arg1: i32) -> (i32, i32, i32) {
    %c0_i32 = arith.constant 0 : i32
    %c0_i32_0 = arith.constant 0 : i32
    %c0_i32_1 = arith.constant 0 : i32
    return %arg1, %c0_i32, %c0_i32_0 : i32, i32, i32
  }
  func.func @transform_11(%arg0: i32, %arg1: i32) -> (i32, i32, i32) {
    %c0_i32 = arith.constant 0 : i32
    %c0_i32_0 = arith.constant 0 : i32
    %c0_i32_1 = arith.constant 0 : i32
    return %arg1, %c0_i32, %c0_i32_0 : i32, i32, i32
  }
  func.func @transform_12(%arg0: i32, %arg1: i32) -> (i32, i32, i32) {
    %c0_i32 = arith.constant 0 : i32
    %c0_i32_0 = arith.constant 0 : i32
    %c0_i32_1 = arith.constant 0 : i32
    return %arg1, %c0_i32, %c0_i32_0 : i32, i32, i32
  }
  func.func @transform_13(%arg0: i32, %arg1: i32) -> (i32, i32, i32) {
    %c0_i32 = arith.constant 0 : i32
    %c0_i32_0 = arith.constant 0 : i32
    %c0_i32_1 = arith.constant 0 : i32
    return %arg0, %c0_i32, %c0_i32_0 : i32, i32, i32
  }
}

</mosaic_0001>

<bundles_post_ra>
// kernel: tpu_custom_call.1
= control target key start
LH: loop header
LB: loop body
LE: loop exit
PB: predicated region body
PF: predicated region fallthrough
CT: control target
= control target key end

     0   :  { %s4829_s0 = inlined_call_operand.hbm [shape: f32[2,8,32], index: 0, kind: input, shape index: {}]   ;;  %s4830_s1 = inlined_call_operand.hbm [shape: bf16[2,32,96], index: 1, kind: input, shape index: {}]   ;;  %s4831_s2 = inlined_call_operand.vmem [shape: f32[2,1,96], index: 2, kind: input, shape index: {}]   ;;  %s4832_s3 = inlined_call_operand.hbm [shape: bf16[2,32,32], index: 3, kind: input, shape index: {}]   ;;  %s4833_s4 = inlined_call_operand.vmem [shape: f32[2,1,32], index: 4, kind: input, shape index: {}]   ;;  %s4834_s5 = inlined_call_operand.vmem [shape: f32[2,1,32], index: 5, kind: input, shape index: {}]   ;;  %s4835_s6 = inlined_call_operand.vmem [shape: f32[2,1,32], index: 6, kind: input, shape index: {}]   ;;  %s4836_s7 = inlined_call_operand.hbm [shape: bf16[2,32,32], index: 7, kind: input, shape index: {}]   ;;  %s4837_s8 = inlined_call_operand.vmem [shape: f32[2,1,32], index: 8, kind: input, shape index: {}]   ;;  %s4838_s9 = inlined_call_operand.hbm [shape: bf16[2,32,32], index: 9, kind: input, shape index: {}]   ;;  %s4839_s10 = inlined_call_operand.vmem [shape: f32[2,1,32], index: 10, kind: input, shape index: {}]   ;;  %s4840_s11 = inlined_call_operand.vmem [shape: f32[2,1,32], index: 11, kind: input, shape index: {}]   ;;  %s4841_s12 = inlined_call_operand.vmem [shape: f32[2,1,32], index: 12, kind: input, shape index: {}]   ;;  %s4842_s13 = inlined_call_operand.hbm [shape: f32[2,8,32], index: 13, kind: output, shape index: {}]  }
   0x1   :  { %4850 = sst [smem:[#allocation20_spill]] %s4829_s0 }
   0x2   :  { %4851 = sst [smem:[#allocation21_spill]] %s4830_s1 }
   0x3   :  { %4852 = sst [smem:[#allocation22_spill]] %s4832_s3 }
   0x4   :  { %4853 = sst [smem:[#allocation23_spill]] %s4836_s7 }
   0x5   :  { %4854 = sst [smem:[#allocation24_spill]] %s4839_s10 }
   0x6   :  { %4855 = sst [smem:[#allocation25_spill]] %s4840_s11 }
   0x7   :  { %4856 = sst [smem:[#allocation26_spill]] %s4841_s12 }
   0x8   :  { %4857 = sst [smem:[#allocation27_spill]] %s4842_s13 }
   0x9   :  { %18 = vsyncpa [#allocation3], 0 }
   0xa   :  { %19 = vsyncpa [#allocation6], 0 }
   0xb   :  { %21 = vsyncpa [#allocation6 + $0x1], 0 }
   0xc   :  { %22 = vsyncpa [#allocation9], 0 }
   0xd   :  { %24 = vsyncpa [#allocation9 + $0x1], 0 }
   0xe   :  { %25 = vsyncpa [#allocation4], 0  ;;  %s4117_s25 = smov 0   ;;  %s4119_s26 = smov 0  }
   0xf   :  { %s4121_s27 = smov 0   ;;  %s4123_s28 = smov 0  }
  0x10   :  { %s4125_s29 = smov 0   ;;  %s4127_s30 = smov 0  }
  0x11 LB: > { %4858 = sst [smem:[#allocation16_spill]] %s4010_s27  ;;  %s40_s14 = sadd.s32 1, %s4018_s29  ;;  %s4022_s30 = sphi %s4127_s30, %s31_s30   ;;  %s4018_s29 = sphi %s4125_s29, %s4895_s29   ;;  %s4014_s28 = sphi %s4123_s28, %s4894_s28   ;;  %s4010_s27 = sphi %s4121_s27, %s4893_s27   ;;  %s4006_s26 = sphi %s4119_s26, %s4897_s26   ;;  %s4002_s25 = sphi %s4117_s25, %s4896_s25  }
  0x12   : > { %4859 = sst [smem:[#allocation17_spill]] %s4018_s29  ;;  %s76_s15 = sadd.s32 1, %s4010_s27 }
  0x13   : > { %p41_p0 = scmp.ge.s32.totalorder %s40_s14, 2  ;;  %p83_p1 = scmp.ne.s32.totalorder %s4010_s27, %s4006_s26 }
  0x14   : > { %p84_p2 = scmp.eq.s32.totalorder %s4022_s30, 0  ;;  %p3662_p4 = scmp.lt.s32.totalorder %s4022_s30, 2 }
  0x15   : > { %s4899_s14 = smov (%p41_p0, %s40_s14), 0  ;;  %s443_s18 = sand.u32 1, %s4010_s27  }
  0x16   : > { %4860 = sst [smem:[#allocation18_spill]] %s4899_s14  ;;  %p85_p3 = por %p84_p2, %p83_p1 }
  0x17   : > { %s73_s16 = ssub.s32 %s4018_s29, %s4899_s14  ;;  %s4160_s19 = sshll.u32 %s4018_s29, 8 }
  0x18   : > { %p74_p5 = scmp.eq.s32.totalorder %s73_s16, 0  ;;  %s4165_s21 = sshll.u32 %s443_s18, 4 }
  0x19   : > { %s4862_s1 = sld [smem:[#allocation21_spill]]  ;;  %p4171_p6 = pnand %p3662_p4, %p85_p3 }
  0x1a   : > { %s4163_s20 = scalar_select %p74_p5, %s4010_s27, %s76_s15  }
  0x1b   : > { %s445_s16 = scalar_lea.vmem [#allocation5], %s4165_s21  ;;  %s4864_s14 = sand.u32 1, %s4022_s30  }
  0x1c   : > { %4861 = sst [smem:[#allocation19_spill]] %s4163_s20  ;;  %s452_s17 = sshll.u32 %s445_s16, 4  ;;  %s453_s17 = int_to_ptr.vmem [resolvable:$true] %s452_s17 }
  0x1d   : > { %s4178_s29 = scalar_lea.sflag [#allocation6], %s4864_s14  ;;  %p3800_p7 = pneg %p4171_p6 }
  0x1e   : > { %s3811_s15 = scalar_lea.vmem %s453_s17, 256  ;;  %s4024_s18 = smov [#allocation5]  }
  0x1f   : > { %s451_s24 = scalar_lea.hbm %s4862_s1, %s4160_s19  ;;  %p3812_p8 = scmp.ne.s32.totalorder %s453_s17, %s3811_s15 }
  0x20   : > { %s3816_s22 = sshll.u32 %s4024_s18, 4  ;;  %s3817_s22 = int_to_ptr.vmem [resolvable:$false] %s3816_s22 }
  0x21   : > { %p3814_p9 = pnand %p3812_p8, %p3800_p7  ;;  %s3818_s23 = scalar_lea.vmem %s3817_s22, 512 }
  0x22   : > { %p3819_p11 = scmp.lt.s32.totalorder %s453_s17, %s3817_s22  ;;  %p3820_p12 = scmp.lt.s32.totalorder %s3818_s23, %s3811_s15 }
  0x23   : > { %p3815_p10 = pneg %p3814_p9 }
  0x24   : > { %p3821_p13 = por %p3820_p12, %p3819_p11 }
  0x26   : > { %p3822_p0 = pnand %p3821_p13, %p3815_p10 }
  0x28   : > { %3825 = shalt.err (!%p3822_p0)
}
  0x29   : > { %s4846_s16 = smov 64   ;;  %s4848_s14 = smov 4  }
  0x2a   : > { %3651 = dma.hbm_to_vmem [thread:$0]  (!%p4171_p6), %s451_s24, 256, %s453_s17, %s4178_s29, %s4846_s16, %s4846_s16, %s4848_s14  }
  0x2b   : > { %s4865_s7 = sld [smem:[#allocation23_spill]]  ;;  %s511_s22 = scalar_lea.vmem [#allocation8], %s4165_s21 }
  0x2c   : > { %s518_s23 = sshll.u32 %s511_s22, 4  ;;  %s4866_s20 = sand.u32 1, %s4022_s30   ;;  %s519_s23 = int_to_ptr.vmem [resolvable:$true] %s518_s23 }
  0x2d   : > { %s4198_s27 = scalar_lea.sflag [#allocation9], %s4866_s20  ;;  %s3839_s12 = scalar_lea.vmem %s519_s23, 256 }
  0x2e   : > { %p3840_p1 = scmp.ne.s32.totalorder %s519_s23, %s3839_s12  ;;  %s4027_s11 = smov [#allocation8]  }
  0x2f   : > { %s3844_s10 = sshll.u32 %s4027_s11, 4  ;;  %s3845_s10 = int_to_ptr.vmem [resolvable:$false] %s3844_s10 }
  0x30   : > { %p3842_p2 = pnand %p3840_p1, %p3800_p7  ;;  %s3846_s17 = scalar_lea.vmem %s3845_s10, 512 }
  0x31   : > { %s517_s15 = scalar_lea.hbm %s4865_s7, %s4160_s19  ;;  %p3847_p4 = scmp.lt.s32.totalorder %s519_s23, %s3845_s10 }
  0x32   : > { %p3843_p3 = pneg %p3842_p2  ;;  %p3848_p5 = scmp.lt.s32.totalorder %s3846_s17, %s3839_s12 }
  0x34   : > { %p3849_p8 = por %p3848_p5, %p3847_p4 }
  0x36   : > { %p3850_p9 = pnand %p3849_p8, %p3843_p3 }
  0x38   : > { %3853 = shalt.err (!%p3850_p9)
}
  0x39   : > { %3657 = dma.hbm_to_vmem [thread:$0]  (!%p4171_p6), %s517_s15, 256, %s519_s23, %s4198_s27, %s4846_s16, %s4846_s16, %s4848_s14  }
  0x3a   : > { %s4210_s1 = sadd.s32 4294967295, %s4022_s30   ;;  %p89_p10 = scmp.ne.s32.totalorder %s4006_s26, %s4002_s25 }
  0x3b   : > { %p90_p11 = scmp.eq.s32.totalorder %s4210_s1, 0  ;;  %p3374_p12 = scmp.ge.s32.totalorder %s4022_s30, 1 }
  0x3c   : > { %p412_p13 = scmp.lt.s32.totalorder %s4022_s30, 3  ;;  %s4028_s12 = smov [#allocation2]  }
  0x3d   : > { %p4219_p0 = por %p90_p11, %p89_p10  ;;  %s427_s20 = sshll.u32 %s4028_s12, 4  ;;  %s428_s20 = int_to_ptr.vmem [resolvable:$true] %s427_s20 }
  0x3e   : > { %p4223_p1 = pnand %p3374_p12, %p412_p13  ;;  %s4869_s3 = sld [smem:[#allocation22_spill]] }
  0x3f   : > { %s472_s22 = scalar_lea.vmem [#allocation7], %s4165_s21  ;;  %s3865_s14 = scalar_lea.vmem %s428_s20, 256 }
  0x40   : > { %p3644_p2 = pneg %p4223_p1  ;;  %s479_s23 = sshll.u32 %s472_s22, 4  ;;  %s4240_s23 = int_to_ptr.vmem [resolvable:$true] %s479_s23 }
  0x41   : > { %p3866_p5 = scmp.ne.s32.totalorder %s428_s20, %s3865_s14  ;;  %p3873_p10 = scmp.lt.s32.totalorder %s428_s20, %s428_s20 }
  0x42   : > { %p4235_p3 = pnand %p3644_p2, %p90_p11  ;;  %p3874_p12 = scmp.lt.s32.totalorder %s3865_s14, %s3865_s14 }
  0x44   : > { %p3856_p4 = pneg %p4235_p3  ;;  %p3875_p13 = por %p3874_p12, %p3873_p10 }
  0x46   : > { %p3868_p8 = pnand %p3866_p5, %p3856_p4 }
  0x48   : > { %p3869_p9 = pneg %p3868_p8 }
  0x4a   : > { %p3876_p2 = pnand %p3875_p13, %p3869_p9 }
  0x4c   : > { %3879 = shalt.err (!%p3876_p2)
}
  0x4d   : > { %s4029_s24 = smov 128   ;;  %s4030_s25 = smov 8  }
  0x4e   : > { %s4871_s0 = sld [smem:[#allocation20_spill]]  ;;  %s3893_s17 = scalar_lea.vmem %s4240_s23, 256 }
  0x4f   : > { %p3894_p4 = scmp.ne.s32.totalorder %s4240_s23, %s3893_s17  ;;  %s4031_s14 = smov [#allocation7]  }
  0x50   : > { %s3898_s12 = sshll.u32 %s4031_s14, 4  ;;  %s3899_s12 = int_to_ptr.vmem [resolvable:$false] %s3898_s12 }
  0x51   : > { %p3896_p5 = pnand %p3894_p4, %p3800_p7  ;;  %s3900_s18 = scalar_lea.vmem %s3899_s12, 512 }
  0x52   : > { %p3901_p9 = scmp.lt.s32.totalorder %s4240_s23, %s3899_s12  ;;  %p3902_p10 = scmp.lt.s32.totalorder %s3900_s18, %s3893_s17 }
  0x53   : > { %p3897_p8 = pneg %p3896_p5 }
  0x54   : > { %3647 = dma.hbm_to_vmem [thread:$0]  (!%p4235_p3), %s4871_s0, 256, %s428_s20, [#allocation3], %s4029_s24, %s4029_s24, %s4030_s25  }
  0x55   : > { %p3903_p12 = por %p3902_p10, %p3901_p9 }
  0x57   : > { %p3904_p13 = pnand %p3903_p12, %p3897_p8 }
  0x59   : > { %3907 = shalt.err (!%p3904_p13)
}
  0x5a   : > { %s4872_s15 = smov 4   ;;  %s4873_s16 = smov 64  }
  0x5b   : > { %s4874_s25 = scalar_lea.hbm %s4869_s3, %s4160_s19  ;;  %s538_s12 = scalar_lea.vmem [#allocation10], %s4165_s21 }
  0x5c   : > { %3654 = dma.hbm_to_vmem [thread:$0]  (!%p4171_p6), %s4874_s25, 256, %s4240_s23, %s4178_s29, %s4873_s16, %s4873_s16, %s4872_s15  }
  0x5d   : > { %s545_s18 = sshll.u32 %s538_s12, 4  ;;  %s4032_s17 = smov [#allocation10]   ;;  %s546_s18 = int_to_ptr.vmem [resolvable:$true] %s545_s18 }
  0x5e   : > { %s3921_s22 = scalar_lea.vmem %s546_s18, 256  ;;  %s3926_s14 = sshll.u32 %s4032_s17, 4  ;;  %s3927_s14 = int_to_ptr.vmem [resolvable:$false] %s3926_s14 }
  0x5f   : > { %p3922_p3 = scmp.ne.s32.totalorder %s546_s18, %s3921_s22  ;;  %s3928_s0 = scalar_lea.vmem %s3927_s14, 512 }
  0x60   : > { %p3929_p5 = scmp.lt.s32.totalorder %s546_s18, %s3927_s14  ;;  %p3930_p8 = scmp.lt.s32.totalorder %s3928_s0, %s3921_s22 }
  0x61   : > { %p3924_p2 = pnand %p3922_p3, %p3800_p7 }
  0x62   : > { %p3931_p9 = por %p3930_p8, %p3929_p5 }
  0x63   : > { %p3925_p4 = pneg %p3924_p2 }
  0x65   : > { %p3932_p10 = pnand %p3931_p9, %p3925_p4 }
  0x67   : > { %3935 = shalt.err (!%p3932_p10)
}
  0x68   : > { %s4875_s23 = scalar_lea.hbm %s4838_s9, %s4160_s19  ;;  %575 = sbr.rel (%p4223_p1) target bundleno = 3311 (0xcef), region = 72 }
  0x69   : > { %3660 = dma.hbm_to_vmem [thread:$0]  (!%p4171_p6), %s4875_s23, 256, %s546_s18, %s4198_s27, %s4873_s16, %s4873_s16, %s4872_s15  }
  0x6d   : > { %3985 = dma.done.wait (%p90_p11), [#allocation3], 256  }
  0x6e   : > { %3987 = vsyncadd (%p90_p11), [#allocation3], 4294967040  ;;  %s581_s0 = sand.u32 1, %s4210_s1   ;;  %s583_s13 = sand.u32 1, %s4006_s26  }
  0x6f   : > { %s4294_s20 = sshll.u32 %s583_s13, 4  ;;  %s582_s24 = scalar_lea.sflag [#allocation6], %s581_s0 }
  0x70   : > { %3989 = dma.done.wait (%p4219_p0), %s582_s24, 512  }
  0x71   : > { %3991 = vsyncadd (%p4219_p0), %s582_s24, 4294966784  ;;  %s600_s11 = scalar_lea.sflag [#allocation9], %s581_s0 }
  0x72   : > { %3993 = dma.done.wait (%p4219_p0), %s600_s11, 512  }
  0x73   : > { %3995 = vsyncadd (%p4219_p0), %s600_s11, 4294966784  ;;  %p690_p6 = scmp.lt.s32.totalorder %s4014_s28, 1  ;;  %s4876_s27 = sld [smem:[#allocation24_spill]] }
  0x74   : > { %s4877_s10 = sld [smem:[#allocation25_spill]]  ;;  %s612_s21 = scalar_lea.vmem [#allocation10], %s4294_s20 }
  0x75   : > { %s4309_s16 = scalar_select %p690_p6, %s4014_s28, 1 }
  0x76   : > { %s4878_s14 = sld [smem:[#allocation26_spill]]  ;;  %p3395_p7 = scmp.ne.s32.totalorder %s4014_s28, 0 }
  0x77   : > { %s701_s13 = scalar_lea.vmem %s4835_s6, %s4309_s16  ;;  %s704_s25 = scalar_lea.vmem %s4837_s8, %s4309_s16 }
  0x78   : > { %719 = sbr.rel (%p3395_p7) target bundleno = 127 (0x7f), region = 96 }
  0x79   : > { %s707_s18 = scalar_lea.vmem %s4876_s27, %s4309_s16 }
  0x7a   : > { %s710_s22 = scalar_lea.vmem %s4877_s10, %s4309_s16 }
  0x7c   : > { %s713_s29 = scalar_lea.vmem %s4878_s14, %s4309_s16 }
  0x7d   : > { %v720_v0 = vld [vmem:[#allocation2] sm:$0xff]  ;;  %vm722_vm0 = vcmask 261120   ;;  %v721_v1 = vld [vmem:[#allocation2 + $0x8] sm:$0xff] }
  0x7e   : > { %723 = vst.msk [vmem:[#allocation11] sm:$0xff] %vm722_vm0, %v720_v0  ;;  %724 = vst.msk [vmem:[#allocation11 + $0x8] sm:$0xff] %vm722_vm0, %v721_v1 }
  0x7f PF: > { %s4879_s27 = scalar_lea.vmem [#allocation5], %s4294_s20  ;;  %v4033_v3 = vmov 0.0   ;;  %vm4034_vm1 = vmmov 0   ;;  %vm751_vm2 = vcmask 261120   ;;  %s4881_s19 = scalar_lea.vmem %s4831_s2, %s4309_s16  ;;  %v4039_v18 = vmov 1983009808  }
  0x80   : > { %v3748_v2 = vld [vmem:[%s4879_s27 + $0x8] sm:$0xff]   ;;  %3500 = vmatprep.subr.bf16.mxu0 %v4033_v3  ;;  %3508 = vmatprep.subr.bf16.mxu1 %v4033_v3  ;;  %s4880_s3 = smov %s4879_s27  ;;  %v3396_v8 = vld [vmem:[%s4881_s19] ss:$0 sm:$0xff]  ;;  %s4035_s15 = smov 104   ;;  %v809_v19 = vunpack.c.l.s4 %v4039_v18  ;;  %v811_v20 = vlaneseq  ;;  %v4040_v23 = vmov 1934713408  }
  0x81   : > { %3501 = vmatpush3.bf16.msra.mxu0 %v3748_v2  ;;  %v3749_v4 = vld [vmem:[%s4880_s3] sm:$0xff]   ;;  %3504 = vmatprep.mubr.msk.bf16.mxu0 %vm4034_vm1, %v4033_v3  ;;  %s4036_s17 = smov 120   ;;  %s4037_s23 = smov 96   ;;  %v841_v24 = vunpack.c.l.s4 %v4040_v23  ;;  %vm1250_vm3 = vcmask 64512   ;;  %vm1490_vm4 = vcmask 1043456   ;;  %vm1821_vm5 = vcmask 130048  }
  0x82   : > { %3502 = vmatprep.subr.bf16.mxu0 %v4033_v3  ;;  %3510 = vmatprep.mubr.msk.bf16.mxu1 %vm4034_vm1, %v4033_v3  ;;  %s4038_s0 = smov 112   ;;  %v810_v21 = vunpack.c.0.s8 %v809_v19  ;;  %v812_v22 = vshrl.u32 %v811_v20, 7  ;;  %s4041_s24 = smov 64   ;;  %vm1823_vm6 = vcmask 195584  }
  0x83   : > { %v842_v30 = vunpack.c.0.s8 %v841_v24  ;;  %s4882_s11 = scalar_lea.vmem [#allocation7], %s4294_s20  ;;  %s4042_s10 = smov 16  }
  0x84   : > { %v4393_v27 = vsub.s32 %v810_v21, %v812_v22  ;;  %s4883_s12 = smov %s4882_s11  ;;  %s4043_s14 = smov 8  }
  0x85   : > { %v725_v5 = vld [vmem:[#allocation11] sm:$0xff]  ;;  %v726_v6 = vld [vmem:[#allocation11 + $0x8] sm:$0xff]  ;;  %3503 = vmatpush3.bf16.msra.mxu0 %v3749_v4  ;;  %v4403_v37 = vsub.s32 %v842_v30, %v812_v22  ;;  %s4044_s27 = smov 24   ;;  %s4884_s28 = scalar_lea.vmem %s4833_s4, %s4309_s16 }
  0x86   : > { %v727_v7 = vpack.c.bf16 %v726_v6, %v725_v5  ;;  %3514 = vmatprep.subr.bf16.mxu0 %v4033_v3  ;;  %s4885_s19 = scalar_lea.vmem [#allocation8], %s4294_s20  ;;  %p3664_p11 = scmp.eq.s32.totalorder %s4210_s1, 1 }
  0x88   : > { %3505 = vmatmul.mubr.msk.bf16.vlgmr.msra.gmra.mxu0 %vm751_vm2, %v727_v7 }
  0x89   : > { %3516 = vmatprep.mubr.msk.bf16.mxu0 %vm4034_vm1, %v4033_v3 }
 0x148   : > { %v789_v9 = vpop.f32.mrf.mxu0 }
 0x149   : > { %v4365_v10 = vadd.f32 %v3396_v8, %v789_v9 }
 0x14a   : > { %v3506_v11 = vpop.f32.mrf.mxu0 }
 0x14b   : > { %803 = vrot.lane.b32.xlu1 %v4365_v10, %s4035_s15  ;;  %797 = vrot.lane.b32.xlu0 %v4365_v10, %s4036_s17 }
 0x14c   : > { %v792_v12 = vpop.f32.mrf.mxu0 }
 0x14d   : > { %v4371_v13 = vadd.f32 %v3396_v8, %v792_v12 }
 0x14e   : > { %v3507_v14 = vpop.f32.mrf.mxu0 }
 0x14f   : > { %946 = vrot.lane.b32.xlu1 %v4365_v10, %s4037_s23  ;;  %800 = vrot.lane.b32.xlu0 %v4365_v10, %s4038_s0 }
 0x1bd   : > { %v4377_v15 = vpop.permute.xlu0 %797  ;;  %v4381_v16 = vpop.permute.xlu1 %803 }
 0x1be   : > { %948 = vrot.lane.b32.xlu0 %v4377_v15, %s4037_s23  ;;  %v822_v28 = vcombine.low %v4377_v15, %v4381_v16  ;;  %v823_v29 = vcombine.high %v4377_v15, %v4381_v16 }
 0x1c0   : > { %v830_v33 = vrot.slane %v822_v28, %v4393_v27  ;;  %v837_v34 = vrot.slane %v823_v29, %v4393_v27 }
 0x1c1   : > { %v4383_v17 = vpop.permute.xlu0 %800  ;;  %v947_v35 = vpop.permute.xlu1 %946 }
 0x1c2   : > { %952 = vrot.lane.b32.xlu0 %v4381_v16, %s4037_s23  ;;  %950 = vrot.lane.b32.xlu1 %v4383_v17, %s4037_s23  ;;  %v806_v25 = vcombine.low %v4365_v10, %v4383_v17  ;;  %v807_v26 = vcombine.high %v4365_v10, %v4383_v17 }
 0x1c4   : > { %v814_v31 = vrot.slane %v806_v25, %v4393_v27  ;;  %v821_v32 = vrot.slane %v807_v26, %v4393_v27 }
 0x1c6   : > { %v838_v38 = vcombine.low %v814_v31, %v830_v33  ;;  %v839_v39 = vcombine.high %v814_v31, %v830_v33  ;;  %v854_v40 = vcombine.low %v821_v32, %v837_v34  ;;  %v855_v41 = vcombine.high %v821_v32, %v837_v34 }
 0x1c8   : > { %v846_v48 = vrot.slane %v838_v38, %v4403_v37  ;;  %v853_v49 = vrot.slane %v839_v39, %v4403_v37  ;;  %v862_v50 = vrot.slane %v854_v40, %v4403_v37  ;;  %v869_v51 = vrot.slane %v855_v41, %v4403_v37 }
 0x1ca   : > { %v874_v60 = vcombine.low %v846_v48, %v853_v49  ;;  %v3400_v61 = vcombine.high %v846_v48, %v853_v49  ;;  %v890_v62 = vcombine.low %v862_v50, %v869_v51  ;;  %v3401_v63 = vcombine.high %v862_v50, %v869_v51 }
 0x1cc   : > { %v881_v9 = vrot.slane %v874_v60, %v4393_v27  ;;  %v889_v11 = vrot.slane %v3400_v61, %v4393_v27  ;;  %v897_v12 = vrot.slane %v890_v62, %v4393_v27  ;;  %v905_v14 = vrot.slane %v3401_v63, %v4393_v27 }
 0x1ce   : > { %v906_v29 = vcombine.low %v881_v9, %v889_v11  ;;  %v922_v30 = vcombine.low %v897_v12, %v905_v14 }
 0x1d0   : > { %v914_v38 = vrot.slane %v906_v29, %v4403_v37  ;;  %v930_v39 = vrot.slane %v922_v30, %v4403_v37 }
 0x230   : > { %v949_v36 = vpop.permute.xlu0 %948 }
 0x234   : > { %v951_v42 = vpop.permute.xlu1 %950  ;;  %v953_v43 = vpop.permute.xlu0 %952 }
 0x235   : > { %v958_v44 = vcombine.low %v947_v35, %v951_v42  ;;  %v959_v45 = vcombine.high %v947_v35, %v951_v42  ;;  %v974_v46 = vcombine.low %v949_v36, %v953_v43  ;;  %v975_v47 = vcombine.high %v949_v36, %v953_v43 }
 0x237   : > { %v966_v52 = vrot.slane %v958_v44, %v4393_v27  ;;  %v973_v53 = vrot.slane %v959_v45, %v4393_v27  ;;  %v982_v54 = vrot.slane %v974_v46, %v4393_v27  ;;  %v989_v55 = vrot.slane %v975_v47, %v4393_v27 }
 0x238   : > { %v907_v44 = vcombine.high %v881_v9, %v889_v11  ;;  %v923_v45 = vcombine.high %v897_v12, %v905_v14  ;;  %v938_v46 = vcombine.low %v914_v38, %v930_v39  ;;  %v939_v47 = vcombine.high %v914_v38, %v930_v39 }
 0x239   : > { %v990_v56 = vcombine.low %v966_v52, %v982_v54  ;;  %v991_v57 = vcombine.high %v966_v52, %v982_v54  ;;  %v1006_v58 = vcombine.low %v973_v53, %v989_v55  ;;  %v1007_v59 = vcombine.high %v973_v53, %v989_v55 }
 0x23a   : > { %v942_v50 = vpack.c.bf16 %v938_v46, %v938_v46  ;;  %v943_v51 = vpack.c.bf16 %v939_v47, %v939_v47  ;;  %v921_v52 = vrot.slane %v907_v44, %v4403_v37  ;;  %v937_v53 = vrot.slane %v923_v45, %v4403_v37 }
 0x23b   : > { %v998_v0 = vrot.slane %v990_v56, %v4403_v37  ;;  %v1005_v1 = vrot.slane %v991_v57, %v4403_v37  ;;  %v1014_v2 = vrot.slane %v1006_v58, %v4403_v37  ;;  %v1021_v4 = vrot.slane %v1007_v59, %v4403_v37 }
 0x23c   : > { %v940_v56 = vcombine.low %v921_v52, %v937_v53  ;;  %v941_v57 = vcombine.high %v921_v52, %v937_v53 }
 0x23d   : > { %v1026_v5 = vcombine.low %v998_v0, %v1005_v1  ;;  %v3402_v6 = vcombine.high %v998_v0, %v1005_v1  ;;  %v1042_v7 = vcombine.low %v1014_v2, %v1021_v4  ;;  %v3403_v8 = vcombine.high %v1014_v2, %v1021_v4 }
 0x23e   : > { %v944_v58 = vpack.c.bf16 %v940_v56, %v940_v56  ;;  %v945_v59 = vpack.c.bf16 %v941_v57, %v941_v57 }
 0x23f   : > { %v1033_v18 = vrot.slane %v1026_v5, %v4393_v27  ;;  %v1041_v19 = vrot.slane %v3402_v6, %v4393_v27  ;;  %v1049_v20 = vrot.slane %v1042_v7, %v4393_v27  ;;  %v1057_v21 = vrot.slane %v3403_v8, %v4393_v27 }
 0x241   : > { %v1058_v22 = vcombine.low %v1033_v18, %v1041_v19  ;;  %v1074_v23 = vcombine.low %v1049_v20, %v1057_v21  ;;  %v1059_v24 = vcombine.high %v1033_v18, %v1041_v19  ;;  %v1075_v25 = vcombine.high %v1049_v20, %v1057_v21 }
 0x243   : > { %v1066_v26 = vrot.slane %v1058_v22, %v4403_v37  ;;  %v1082_v28 = vrot.slane %v1074_v23, %v4403_v37  ;;  %v1073_v33 = vrot.slane %v1059_v24, %v4403_v37  ;;  %v1089_v34 = vrot.slane %v1075_v25, %v4403_v37 }
 0x245   : > { %v1090_v31 = vcombine.low %v1066_v26, %v1082_v28  ;;  %v1091_v32 = vcombine.high %v1066_v26, %v1082_v28  ;;  %v1092_v42 = vcombine.low %v1073_v33, %v1089_v34  ;;  %v1093_v43 = vcombine.high %v1073_v33, %v1089_v34 }
 0x247   : > { %v1094_v35 = vpack.c.bf16 %v1090_v31, %v1090_v31  ;;  %v1095_v36 = vpack.c.bf16 %v1091_v32, %v1091_v32  ;;  %v1096_v48 = vpack.c.bf16 %v1092_v42, %v1092_v42  ;;  %v1097_v49 = vpack.c.bf16 %v1093_v43, %v1093_v43 }
 0x249   : > { %v1255_v40 = vsel %vm1250_vm3, %v1094_v35, 0  ;;  %v1301_v41 = vsel %vm1250_vm3, %v1095_v36, 0  ;;  %v1347_v54 = vsel %vm1250_vm3, %v1096_v48, 0  ;;  %v1393_v55 = vsel %vm1250_vm3, %v1097_v49, 0 }
 0x24a   : > { %3509 = vmatpush3.bf16.xpose.msra.mxu1 %v1255_v40  ;;  %3515 = vmatpush3.bf16.xpose.msra.mxu0 %v1301_v41 }
 0x24b   : > { %3520 = vmatprep.subr.bf16.mxu1 %v4033_v3  ;;  %3526 = vmatprep.subr.bf16.mxu0 %v4033_v3 }
 0x251   : > { %3511 = vmatmul.mubr.msk.bf16.vlgmr.msra.gmra.mxu1 %vm1250_vm3, %v942_v50  ;;  %3517 = vmatmul.mubr.msk.bf16.vlgmr.msra.gmra.mxu0 %vm1250_vm3, %v943_v51 }
 0x252   : > { %3521 = vmatpush3.bf16.xpose.msra.mxu1 %v1347_v54  ;;  %3527 = vmatpush3.bf16.xpose.msra.mxu0 %v1393_v55 }
 0x253   : > { %3522 = vmatprep.mubr.msk.bf16.mxu1 %vm4034_vm1, %v4033_v3  ;;  %3528 = vmatprep.mubr.msk.bf16.mxu0 %vm4034_vm1, %v4033_v3 }
 0x254   : > { %3532 = vmatprep.subr.bf16.mxu1 %v4033_v3  ;;  %3538 = vmatprep.subr.bf16.mxu0 %v4033_v3 }
 0x259   : > { %3523 = vmatmul.mubr.msk.bf16.vlgmr.msra.gmra.mxu1 %vm1250_vm3, %v944_v58  ;;  %3529 = vmatmul.mubr.msk.bf16.vlgmr.msra.gmra.mxu0 %vm1250_vm3, %v945_v59 }
 0x25a   : > { %3534 = vmatprep.mubr.msk.bf16.mxu1 %vm4034_vm1, %v4033_v3  ;;  %3540 = vmatprep.mubr.msk.bf16.mxu0 %vm4034_vm1, %v4033_v3 }
 0x311   : > { %v1291_v60 = vpop.f32.mrf.mxu1  ;;  %v1337_v61 = vpop.f32.mrf.mxu0 }
 0x312   : > { %v1435_v62 = vmul.f32 0.35355338, %v1291_v60  ;;  %v1436_v63 = vmul.f32 0.35355338, %v1337_v61 }
 0x313   : > { %v3512_v0 = vpop.f32.mrf.mxu1  ;;  %v3518_v1 = vpop.f32.mrf.mxu0 }
 0x314   : > { %v1439_v2 = vsel %vm1250_vm3, %v1435_v62, -inf  ;;  %v1442_v4 = vsel %vm1250_vm3, %v1436_v63, -inf }
 0x315   : > { %1440 = vmax.xlane.f32.xlu1 %v1439_v2  ;;  %v1294_v5 = vpop.f32.mrf.mxu1  ;;  %1443 = vmax.xlane.f32.xlu0 %v1442_v4  ;;  %v1340_v6 = vpop.f32.mrf.mxu0 }
 0x317   : > { %v3513_v7 = vpop.f32.mrf.mxu1  ;;  %v3519_v8 = vpop.f32.mrf.mxu0 }
 0x319   : > { %v1383_v9 = vpop.f32.mrf.mxu1  ;;  %v1429_v11 = vpop.f32.mrf.mxu0 }
 0x31a   : > { %v1437_v12 = vmul.f32 0.35355338, %v1383_v9  ;;  %v1438_v24 = vmul.f32 0.35355338, %v1429_v11 }
 0x31b   : > { %v3524_v14 = vpop.f32.mrf.mxu1  ;;  %v3530_v18 = vpop.f32.mrf.mxu0 }
 0x31c   : > { %v1445_v19 = vsel %vm1250_vm3, %v1437_v12, -inf  ;;  %v1448_v25 = vsel %vm1250_vm3, %v1438_v24, -inf }
 0x31d   : > { %v1386_v20 = vpop.f32.mrf.mxu1  ;;  %1446 = vmax.xlane.f32.xlu0 %v1445_v19  ;;  %v1432_v21 = vpop.f32.mrf.mxu0 }
 0x31f   : > { %v3525_v22 = vpop.f32.mrf.mxu1  ;;  %v3531_v23 = vpop.f32.mrf.mxu0 }
 0x326   : > { %1829 = vrot.lane.b32.xlu1 %v4371_v13, %s4038_s0  ;;  %s4887_s0 = scalar_lea.vmem %s4834_s5, %s4309_s16 }
 0x32a   : > { %1832 = vrot.lane.b32.xlu1 %v4371_v13, %s4035_s15  ;;  %s4886_s15 = smov %s4885_s19 }
 0x333   : > { %1826 = vrot.lane.b32.xlu0 %v4371_v13, %s4036_s17 }
 0x337   : > { %1098 = vrot.lane.b32.xlu0 %v4365_v10, %s4041_s24 }
 0x33b   : > { %1102 = vrot.lane.b32.xlu0 %v4383_v17, %s4041_s24 }
 0x33f   : > { %1975 = vrot.lane.b32.xlu0 %v4371_v13, %s4037_s23 }
 0x34e   : > { %1449 = vmax.xlane.f32.xlu1 %v1448_v25 }
 0x35f   : > { %1100 = vrot.lane.b32.xlu1 %v4377_v15, %s4041_s24 }
 0x363   : > { %1104 = vrot.lane.b32.xlu1 %v4381_v16, %s4041_s24 }
 0x39e   : > { %v1441_v26 = vpop.xlane.xlu1 %1440  ;;  %v1444_v10 = vpop.xlane.xlu0 %1443 }
 0x39f   : > { %v1451_v28 = vsub.f32 %v1435_v62, %v1441_v26  ;;  %v1452_v16 = vsub.f32 %v1436_v63, %v1444_v10 }
 0x3a1   : > { %v1455_v29 = vmul.f32 1.442695, %v1451_v28  ;;  %v1457_v36 = vmul.f32 1.442695, %v1452_v16 }
 0x3a2   : > { %v4487_v39 = vpop.permute.xlu1 %1829 }
 0x3a3   : > { %3756 = vpow2.f32 %v1455_v29 }
 0x3a6   : > { %v1447_v30 = vpop.xlane.xlu0 %1446  ;;  %v4493_v41 = vpop.permute.xlu1 %1832 }
 0x3a7   : > { %v1453_v17 = vsub.f32 %v1437_v12, %v1447_v30 }
 0x3a9   : > { %v1459_v31 = vmul.f32 1.442695, %v1453_v17 }
 0x3aa   : > { %v4473_v32 = vpop.permute.xlu0 %1826 }
 0x3ab   : > { %3758 = vpow2.f32 %v1459_v31  ;;  %1977 = vrot.lane.b32.xlu1 %v4473_v32, %s4037_s23 }
 0x3ac   : > { %3760 = vpow2.f32 %v1457_v36 }
 0x3ae   : > { %v1099_v42 = vpop.permute.xlu0 %1098 }
 0x3b0   : > { %v4477_v33 = vpop.eup %3756 }
 0x3b1   : > { %v1463_v15 = vsel %vm1250_vm3, %v4477_v33, 0.0 }
 0x3b2   : > { %1464 = vadd.xlane.f32.xlu0 %v1463_v15  ;;  %v1103_v46 = vpop.permute.xlu0 %1102 }
 0x3b3   : > { %v1110_v48 = vcombine.low %v1099_v42, %v1103_v46  ;;  %v1111_v49 = vcombine.high %v1099_v42, %v1103_v46 }
 0x3b5   : > { %v1118_v53 = vrot.slane %v1110_v48, %v4393_v27  ;;  %v1125_v54 = vrot.slane %v1111_v49, %v4393_v27 }
 0x3b6   : > { %v1976_v15 = vpop.permute.xlu0 %1975 }
 0x3b8   : > { %v4481_v34 = vpop.eup %3758 }
 0x3b9   : > { %v1469_v35 = vsel %vm1250_vm3, %v4481_v34, 0.0  ;;  %v4485_v38 = vpop.eup %3760 }
 0x3ba   : > { %1470 = vadd.xlane.f32.xlu0 %v1469_v35  ;;  %v1466_v40 = vsel %vm1250_vm3, %v4485_v38, 0.0 }
 0x3cf   : > { %1467 = vadd.xlane.f32.xlu1 %v1466_v40 }
 0x3d0   : > { %1979 = vrot.lane.b32.xlu0 %v4487_v39, %s4037_s23 }
 0x3d7   : > { %v1450_v43 = vpop.xlane.xlu1 %1449 }
 0x3d8   : > { %v1454_v44 = vsub.f32 %v1438_v24, %v1450_v43 }
 0x3da   : > { %v1461_v45 = vmul.f32 1.442695, %v1454_v44 }
 0x3db   : > { %v1101_v47 = vpop.permute.xlu1 %1100 }
 0x3dc   : > { %3762 = vpow2.f32 %v1461_v45 }
 0x3df   : > { %v1105_v50 = vpop.permute.xlu1 %1104 }
 0x3e0   : > { %v1126_v51 = vcombine.low %v1101_v47, %v1105_v50  ;;  %v1127_v52 = vcombine.high %v1101_v47, %v1105_v50 }
 0x3e2   : > { %v1134_v55 = vrot.slane %v1126_v51, %v4393_v27  ;;  %v1141_v56 = vrot.slane %v1127_v52, %v4393_v27 }
 0x3e4   : > { %v1142_v57 = vcombine.low %v1118_v53, %v1134_v55  ;;  %v1143_v58 = vcombine.high %v1118_v53, %v1134_v55  ;;  %v1158_v59 = vcombine.low %v1125_v54, %v1141_v56  ;;  %v1159_v60 = vcombine.high %v1125_v54, %v1141_v56 }
 0x3e5   : > { %v1852_v54 = vcombine.high %v4473_v32, %v4493_v41  ;;  %v1836_v55 = vcombine.high %v4371_v13, %v4487_v39 }
 0x3e6   : > { %v1150_v61 = vrot.slane %v1142_v57, %v4403_v37  ;;  %v1157_v62 = vrot.slane %v1143_v58, %v4403_v37  ;;  %v1166_v63 = vrot.slane %v1158_v59, %v4403_v37  ;;  %v1173_v0 = vrot.slane %v1159_v60, %v4403_v37 }
 0x3e7   : > { %v1866_v57 = vrot.slane %v1852_v54, %v4393_v27  ;;  %v1850_v59 = vrot.slane %v1836_v55, %v4393_v27 }
 0x3e8   : > { %v1178_v1 = vcombine.low %v1150_v61, %v1157_v62  ;;  %v3404_v2 = vcombine.high %v1150_v61, %v1157_v62  ;;  %v1194_v4 = vcombine.low %v1166_v63, %v1173_v0  ;;  %v3405_v5 = vcombine.high %v1166_v63, %v1173_v0 }
 0x3e9   : > { %v4503_v6 = vpop.eup %3762  ;;  %v1883_v0 = vcombine.low %v1850_v59, %v1866_v57 }
 0x3ea   : > { %v1185_v7 = vrot.slane %v1178_v1, %v4393_v27  ;;  %v1193_v8 = vrot.slane %v3404_v2, %v4393_v27  ;;  %v1201_v9 = vrot.slane %v1194_v4, %v4393_v27  ;;  %v1209_v11 = vrot.slane %v3405_v5, %v4393_v27 }
 0x3eb   : > { %v1472_v12 = vsel %vm1250_vm3, %v4503_v6, 0.0  ;;  %v1884_v1 = vcombine.high %v1850_v59, %v1866_v57 }
 0x3ec   : > { %1473 = vadd.xlane.f32.xlu1 %v1472_v12  ;;  %v1210_v14 = vcombine.low %v1185_v7, %v1193_v8  ;;  %v1226_v18 = vcombine.low %v1201_v9, %v1209_v11  ;;  %v1211_v19 = vcombine.high %v1185_v7, %v1193_v8  ;;  %v1227_v20 = vcombine.high %v1201_v9, %v1209_v11 }
 0x3ed   : > { %v1891_v12 = vrot.slane %v1883_v0, %v4403_v37 }
 0x3ee   : > { %v1218_v21 = vrot.slane %v1210_v14, %v4403_v37  ;;  %v1234_v22 = vrot.slane %v1226_v18, %v4403_v37  ;;  %v1225_v23 = vrot.slane %v1211_v19, %v4403_v37  ;;  %v1241_v24 = vrot.slane %v1227_v20, %v4403_v37 }
 0x3ef   : > { %v1898_v14 = vrot.slane %v1884_v1, %v4403_v37 }
 0x3f0   : > { %v1242_v25 = vcombine.low %v1218_v21, %v1234_v22  ;;  %v1243_v26 = vcombine.high %v1218_v21, %v1234_v22  ;;  %v1244_v28 = vcombine.low %v1225_v23, %v1241_v24  ;;  %v1245_v29 = vcombine.high %v1225_v23, %v1241_v24 }
 0x3f2   : > { %v1246_v10 = vpack.c.bf16 %v1242_v25, %v1242_v25  ;;  %v1247_v30 = vpack.c.bf16 %v1243_v26, %v1243_v26  ;;  %v1248_v42 = vpack.c.bf16 %v1244_v28, %v1244_v28  ;;  %v1249_v51 = vpack.c.bf16 %v1245_v29, %v1245_v29 }
 0x3f3   : > { %v1919_v29 = vcombine.low %v1891_v12, %v1898_v14 }
 0x3f4   : > { %v1492_v17 = vsel %vm1490_vm4, %v1246_v10, 0  ;;  %v1538_v31 = vsel %vm1490_vm4, %v1247_v30, 0  ;;  %v1584_v44 = vsel %vm1490_vm4, %v1248_v42, 0  ;;  %v1630_v53 = vsel %vm1490_vm4, %v1249_v51, 0 }
 0x3f5   : > { %3533 = vmatpush3.bf16.msra.mxu1 %v1492_v17  ;;  %3539 = vmatpush3.bf16.msra.mxu0 %v1538_v31  ;;  %v3417_v10 = vcombine.high %v1891_v12, %v1898_v14 }
 0x3f6   : > { %3544 = vmatprep.subr.bf16.mxu1 %v4033_v3  ;;  %3550 = vmatprep.subr.bf16.mxu0 %v4033_v3 }
 0x3fd   : > { %1981 = vrot.lane.b32.xlu1 %v4493_v41, %s4037_s23 }
 0x41d   : > { %v1978_v47 = vpop.permute.xlu1 %1977 }
 0x43b   : > { %v1465_v16 = vpop.xlane.xlu0 %1464 }
 0x43c   : > { %3764 = vrcp.f32 %v1465_v16 }
 0x443   : > { %v1471_v35 = vpop.xlane.xlu0 %1470 }
 0x444   : > { %3766 = vrcp.f32 %v1471_v35 }
 0x447   : > { %v1980_v60 = vpop.permute.xlu0 %1979 }
 0x448   : > { %v1987_v2 = vcombine.low %v1976_v15, %v1980_v60  ;;  %v1988_v4 = vcombine.high %v1976_v15, %v1980_v60 }
 0x449   : > { %v3765_v36 = vpop.eup %3764 }
 0x44a   : > { %v1479_v40 = vmul.f32 %v3765_v36, %v4477_v33  ;;  %v1995_v18 = vrot.slane %v1987_v2, %v4393_v27  ;;  %v2002_v19 = vrot.slane %v1988_v4, %v4393_v27 }
 0x44c   : > { %v1483_v43 = vpack.c.bf16 %v1479_v40, %v1479_v40 }
 0x44e   : > { %3535 = vmatmul.mubr.msk.bf16.vlgmr.msra.gmra.mxu1 %vm1250_vm3, %v1483_v43 }
 0x44f   : > { %3545 = vmatpush3.bf16.msra.mxu1 %v1584_v44  ;;  %3546 = vmatprep.mubr.msk.bf16.mxu1 %vm4034_vm1, %v4033_v3 }
 0x450   : > { %3556 = vmatprep.subr.bf16.mxu1 %v4033_v3 }
 0x451   : > { %v3767_v45 = vpop.eup %3766 }
 0x452   : > { %v1481_v46 = vmul.f32 %v3767_v45, %v4481_v34  ;;  %v1851_v34 = vcombine.low %v4473_v32, %v4493_v41  ;;  %v1926_v45 = vrot.slane %v1919_v29, %v4393_v27 }
 0x454   : > { %v1485_v48 = vpack.c.bf16 %v1481_v46, %v1481_v46  ;;  %v1859_v56 = vrot.slane %v1851_v34, %v4393_v27  ;;  %v1934_v46 = vrot.slane %v3417_v10, %v4393_v27 }
 0x456   : > { %3547 = vmatmul.mubr.msk.bf16.vlgmr.msra.gmra.mxu1 %vm1250_vm3, %v1485_v48  ;;  %v1951_v57 = vcombine.low %v1926_v45, %v1934_v46 }
 0x457   : > { %3558 = vmatprep.mubr.msk.bf16.mxu1 %vm4034_vm1, %v4033_v3 }
 0x458   : > { %v1468_v33 = vpop.xlane.xlu1 %1467  ;;  %v1959_v0 = vrot.slane %v1951_v57, %v4403_v37 }
 0x459   : > { %3768 = vrcp.f32 %v1468_v33 }
 0x466   : > { %v3769_v49 = vpop.eup %3768 }
 0x467   : > { %v1480_v50 = vmul.f32 %v3769_v49, %v4485_v38  ;;  %v1835_v38 = vcombine.low %v4371_v13, %v4487_v39 }
 0x469   : > { %v1484_v52 = vpack.c.bf16 %v1480_v50, %v1480_v50  ;;  %v1843_v58 = vrot.slane %v1835_v38, %v4393_v27 }
 0x46b   : > { %3541 = vmatmul.mubr.msk.bf16.vlgmr.msra.gmra.mxu0 %vm1250_vm3, %v1484_v52  ;;  %v1867_v62 = vcombine.low %v1843_v58, %v1859_v56  ;;  %v1868_v63 = vcombine.high %v1843_v58, %v1859_v56 }
 0x46c   : > { %3551 = vmatpush3.bf16.msra.mxu0 %v1630_v53  ;;  %3552 = vmatprep.mubr.msk.bf16.mxu0 %vm4034_vm1, %v4033_v3 }
 0x46d   : > { %3562 = vmatprep.subr.bf16.mxu0 %v4033_v3  ;;  %v1875_v9 = vrot.slane %v1867_v62, %v4403_v37  ;;  %v1882_v11 = vrot.slane %v1868_v63, %v4403_v37 }
 0x46f   : > { %v1903_v26 = vcombine.low %v1875_v9, %v1882_v11  ;;  %v3416_v28 = vcombine.high %v1875_v9, %v1882_v11  ;;  %v1952_v11 = vcombine.high %v1926_v45, %v1934_v46 }
 0x471   : > { %v1910_v43 = vrot.slane %v1903_v26, %v4393_v27  ;;  %v1918_v44 = vrot.slane %v3416_v28, %v4393_v27 }
 0x473   : > { %v1935_v56 = vcombine.low %v1910_v43, %v1918_v44 }
 0x475   : > { %v1474_v61 = vpop.xlane.xlu1 %1473  ;;  %v1943_v63 = vrot.slane %v1935_v56, %v4403_v37 }
 0x476   : > { %3770 = vrcp.f32 %v1474_v61 }
 0x477   : > { %v1968_v9 = vcombine.high %v1943_v63, %v1959_v0 }
 0x479   : > { %v1982_v5 = vpop.permute.xlu1 %1981 }
 0x47a   : > { %v2003_v7 = vcombine.low %v1978_v47, %v1982_v5  ;;  %v2004_v8 = vcombine.high %v1978_v47, %v1982_v5 }
 0x47c   : > { %v2011_v20 = vrot.slane %v2003_v7, %v4393_v27  ;;  %v2018_v21 = vrot.slane %v2004_v8, %v4393_v27  ;;  %v1936_v7 = vcombine.high %v1910_v43, %v1918_v44  ;;  %v1967_v8 = vcombine.low %v1943_v63, %v1959_v0 }
 0x47e   : > { %v2019_v22 = vcombine.low %v1995_v18, %v2011_v20  ;;  %v2020_v23 = vcombine.high %v1995_v18, %v2011_v20  ;;  %v2035_v24 = vcombine.low %v2002_v19, %v2018_v21  ;;  %v2036_v25 = vcombine.high %v2002_v19, %v2018_v21 }
 0x47f   : > { %v1971_v18 = vpack.c.bf16 %v1967_v8, %v1967_v8  ;;  %v1972_v19 = vpack.c.bf16 %v1968_v9, %v1968_v9  ;;  %v1950_v20 = vrot.slane %v1936_v7, %v4403_v37  ;;  %v1966_v21 = vrot.slane %v1952_v11, %v4403_v37 }
 0x480   : > { %v2027_v30 = vrot.slane %v2019_v22, %v4403_v37  ;;  %v2034_v17 = vrot.slane %v2020_v23, %v4403_v37  ;;  %v2043_v31 = vrot.slane %v2035_v24, %v4403_v37  ;;  %v2050_v15 = vrot.slane %v2036_v25, %v4403_v37 }
 0x481   : > { %v1969_v24 = vcombine.low %v1950_v20, %v1966_v21  ;;  %v1970_v25 = vcombine.high %v1950_v20, %v1966_v21 }
 0x482   : > { %v2055_v16 = vcombine.low %v2027_v30, %v2034_v17  ;;  %v3418_v35 = vcombine.high %v2027_v30, %v2034_v17  ;;  %v2071_v36 = vcombine.low %v2043_v31, %v2050_v15  ;;  %v3419_v40 = vcombine.high %v2043_v31, %v2050_v15 }
 0x483   : > { %v3771_v42 = vpop.eup %3770  ;;  %v1973_v26 = vpack.c.bf16 %v1969_v24, %v1969_v24  ;;  %v1974_v28 = vpack.c.bf16 %v1970_v25, %v1970_v25 }
 0x484   : > { %v2062_v47 = vrot.slane %v2055_v16, %v4393_v27  ;;  %v2070_v48 = vrot.slane %v3418_v35, %v4393_v27  ;;  %v2078_v33 = vrot.slane %v2071_v36, %v4393_v27  ;;  %v2086_v49 = vrot.slane %v3419_v40, %v4393_v27 }
 0x485   : > { %v1482_v50 = vmul.f32 %v3771_v42, %v4503_v6 }
 0x486   : > { %v2087_v51 = vcombine.low %v2062_v47, %v2070_v48  ;;  %v2103_v52 = vcombine.low %v2078_v33, %v2086_v49  ;;  %v2088_v53 = vcombine.high %v2062_v47, %v2070_v48  ;;  %v2104_v34 = vcombine.high %v2078_v33, %v2086_v49 }
 0x487   : > { %v1486_v54 = vpack.c.bf16 %v1482_v50, %v1482_v50 }
 0x488   : > { %v2095_v38 = vrot.slane %v2087_v51, %v4403_v37  ;;  %v2111_v55 = vrot.slane %v2103_v52, %v4403_v37  ;;  %v2102_v6 = vrot.slane %v2088_v53, %v4403_v37  ;;  %v2118_v60 = vrot.slane %v2104_v34, %v4403_v37 }
 0x489   : > { %3553 = vmatmul.mubr.msk.bf16.vlgmr.msra.gmra.mxu0 %vm1250_vm3, %v1486_v54 }
 0x48a   : > { %v2119_v58 = vcombine.low %v2095_v38, %v2111_v55  ;;  %v2120_v59 = vcombine.high %v2095_v38, %v2111_v55  ;;  %3564 = vmatprep.mubr.msk.bf16.mxu0 %vm4034_vm1, %v4033_v3  ;;  %v2121_v4 = vcombine.low %v2102_v6, %v2118_v60  ;;  %v2122_v5 = vcombine.high %v2102_v6, %v2118_v60 }
 0x48c   : > { %v2123_v61 = vpack.c.bf16 %v2119_v58, %v2119_v58  ;;  %v2124_v62 = vpack.c.bf16 %v2120_v59, %v2120_v59  ;;  %v2125_v12 = vpack.c.bf16 %v2121_v4, %v2121_v4  ;;  %v2126_v14 = vpack.c.bf16 %v2122_v5, %v2122_v5 }
 0x48e   : > { %v2283_v1 = vsel %vm1250_vm3, %v2123_v61, 0  ;;  %v2329_v2 = vsel %vm1250_vm3, %v2124_v62, 0  ;;  %v2375_v22 = vsel %vm1250_vm3, %v2125_v12, 0  ;;  %v2421_v23 = vsel %vm1250_vm3, %v2126_v14, 0 }
 0x48f   : > { %3557 = vmatpush3.bf16.xpose.msra.mxu1 %v2283_v1  ;;  %3563 = vmatpush3.bf16.xpose.msra.mxu0 %v2329_v2 }
 0x490   : > { %3568 = vmatprep.subr.bf16.mxu1 %v4033_v3  ;;  %3574 = vmatprep.subr.bf16.mxu0 %v4033_v3 }
 0x496   : > { %3559 = vmatmul.mubr.msk.bf16.vlgmr.msra.gmra.mxu1 %vm1250_vm3, %v1971_v18  ;;  %3565 = vmatmul.mubr.msk.bf16.vlgmr.msra.gmra.mxu0 %vm1250_vm3, %v1972_v19 }
 0x497   : > { %3569 = vmatpush3.bf16.xpose.msra.mxu1 %v2375_v22  ;;  %3575 = vmatpush3.bf16.xpose.msra.mxu0 %v2421_v23 }
 0x498   : > { %3570 = vmatprep.mubr.msk.bf16.mxu1 %vm4034_vm1, %v4033_v3  ;;  %3576 = vmatprep.mubr.msk.bf16.mxu0 %vm4034_vm1, %v4033_v3 }
 0x499   : > { %3580 = vmatprep.subr.bf16.mxu1 %v4033_v3  ;;  %3586 = vmatprep.subr.bf16.mxu0 %v4033_v3 }
 0x49e   : > { %3571 = vmatmul.mubr.msk.bf16.vlgmr.msra.gmra.mxu1 %vm1250_vm3, %v1973_v26  ;;  %3577 = vmatmul.mubr.msk.bf16.vlgmr.msra.gmra.mxu0 %vm1250_vm3, %v1974_v28 }
 0x49f   : > { %3582 = vmatprep.mubr.msk.bf16.mxu1 %vm4034_vm1, %v4033_v3  ;;  %3588 = vmatprep.mubr.msk.bf16.mxu0 %vm4034_vm1, %v4033_v3 }
 0x50e   : > { %v1528_v29 = vpop.f32.mrf.mxu1 }
 0x510   : > { %v3536_v10 = vpop.f32.mrf.mxu1 }
 0x512   : > { %v1531_v30 = vpop.f32.mrf.mxu1 }
 0x514   : > { %v3537_v17 = vpop.f32.mrf.mxu1 }
 0x516   : > { %v1620_v31 = vpop.f32.mrf.mxu1 }
 0x517   : > { %v1672_v15 = vcombine.low %v1528_v29, %v1620_v31  ;;  %v1673_v16 = vcombine.high %v1528_v29, %v1620_v31 }
 0x518   : > { %v3548_v35 = vpop.f32.mrf.mxu1 }
 0x519   : > { %v1680_v49 = vrot.slane %v1672_v15, %v4393_v27  ;;  %v1687_v50 = vrot.slane %v1673_v16, %v4393_v27 }
 0x51a   : > { %v1623_v36 = vpop.f32.mrf.mxu1 }
 0x51c   : > { %v3549_v40 = vpop.f32.mrf.mxu1 }
 0x52b   : > { %v1574_v42 = vpop.f32.mrf.mxu0 }
 0x52d   : > { %v3542_v43 = vpop.f32.mrf.mxu0 }
 0x52f   : > { %v1577_v44 = vpop.f32.mrf.mxu0 }
 0x531   : > { %v3543_v45 = vpop.f32.mrf.mxu0 }
 0x549   : > { %v1666_v46 = vpop.f32.mrf.mxu0 }
 0x54a   : > { %v1688_v47 = vcombine.low %v1574_v42, %v1666_v46  ;;  %v1689_v48 = vcombine.high %v1574_v42, %v1666_v46 }
 0x54b   : > { %v3554_v33 = vpop.f32.mrf.mxu0 }
 0x54c   : > { %v1696_v51 = vrot.slane %v1688_v47, %v4393_v27  ;;  %v1703_v52 = vrot.slane %v1689_v48, %v4393_v27 }
 0x54d   : > { %v1669_v53 = vpop.f32.mrf.mxu0 }
 0x54e   : > { %v1704_v34 = vcombine.low %v1680_v49, %v1696_v51  ;;  %v1705_v54 = vcombine.high %v1680_v49, %v1696_v51  ;;  %v1720_v38 = vcombine.low %v1687_v50, %v1703_v52  ;;  %v1721_v55 = vcombine.high %v1687_v50, %v1703_v52 }
 0x54f   : > { %v3555_v56 = vpop.f32.mrf.mxu0 }
 0x550   : > { %v1712_v57 = vrot.slane %v1704_v34, %v4403_v37  ;;  %v1719_v58 = vrot.slane %v1705_v54, %v4403_v37  ;;  %v1728_v59 = vrot.slane %v1720_v38, %v4403_v37  ;;  %v1735_v6 = vrot.slane %v1721_v55, %v4403_v37 }
 0x552   : > { %v1740_v60 = vcombine.low %v1712_v57, %v1719_v58  ;;  %v3414_v61 = vcombine.high %v1712_v57, %v1719_v58  ;;  %v1756_v62 = vcombine.low %v1728_v59, %v1735_v6  ;;  %v3415_v63 = vcombine.high %v1728_v59, %v1735_v6 }
 0x554   : > { %v1747_v0 = vrot.slane %v1740_v60, %v4393_v27  ;;  %v1755_v1 = vrot.slane %v3414_v61, %v4393_v27  ;;  %v1763_v2 = vrot.slane %v1756_v62, %v4393_v27  ;;  %v1771_v4 = vrot.slane %v3415_v63, %v4393_v27 }
 0x556   : > { %v2319_v5 = vpop.f32.mrf.mxu1  ;;  %v2365_v7 = vpop.f32.mrf.mxu0  ;;  %v1773_v8 = vcombine.high %v1747_v0, %v1755_v1  ;;  %v1789_v9 = vcombine.high %v1763_v2, %v1771_v4  ;;  %v1772_v11 = vcombine.low %v1747_v0, %v1755_v1  ;;  %v1788_v12 = vcombine.low %v1763_v2, %v1771_v4 }
 0x557   : > { %v2463_v14 = vmul.f32 0.35355338, %v2319_v5  ;;  %v2464_v18 = vmul.f32 0.35355338, %v2365_v7 }
 0x558   : > { %v3560_v19 = vpop.f32.mrf.mxu1  ;;  %v3566_v20 = vpop.f32.mrf.mxu0  ;;  %v4614_v21 = vrot.slane %v1773_v8, %v4403_v37  ;;  %v4617_v22 = vrot.slane %v1789_v9, %v4403_v37  ;;  %v4620_v23 = vrot.slane %v1772_v11, %v4403_v37  ;;  %v4623_v24 = vrot.slane %v1788_v12, %v4403_v37 }
 0x559   : > { %v2467_v25 = vsel %vm1250_vm3, %v2463_v14, -inf  ;;  %v2470_v26 = vsel %vm1250_vm3, %v2464_v18, -inf }
 0x55a   : > { %2468 = vmax.xlane.f32.xlu0 %v2467_v25  ;;  %v2322_v28 = vpop.f32.mrf.mxu1  ;;  %2471 = vmax.xlane.f32.xlu1 %v2470_v26  ;;  %v2368_v29 = vpop.f32.mrf.mxu0  ;;  %v1806_v10 = vcombine.low %v4614_v21, %v4617_v22  ;;  %v1804_v30 = vcombine.low %v4620_v23, %v4623_v24  ;;  %v1805_v17 = vcombine.high %v4620_v23, %v4623_v24  ;;  %v3432_v23 = vld [vmem:[%s4884_s28] ss:$0 sm:$0xff] }
 0x55b   : > { %v1807_v31 = vcombine.high %v4614_v21, %v4617_v22 }
 0x55c   : > { %v3561_v15 = vpop.f32.mrf.mxu1  ;;  %v3567_v16 = vpop.f32.mrf.mxu0 }
 0x55e   : > { %v2411_v35 = vpop.f32.mrf.mxu1  ;;  %v2457_v36 = vpop.f32.mrf.mxu0 }
 0x55f   : > { %v2465_v40 = vmul.f32 0.35355338, %v2411_v35  ;;  %v2466_v44 = vmul.f32 0.35355338, %v2457_v36 }
 0x560   : > { %v3572_v42 = vpop.f32.mrf.mxu1  ;;  %v3578_v43 = vpop.f32.mrf.mxu0 }
 0x561   : > { %v2473_v45 = vsel %vm1250_vm3, %v2465_v40, -inf  ;;  %v2476_v49 = vsel %vm1250_vm3, %v2466_v44, -inf }
 0x562   : > { %2474 = vmax.xlane.f32.xlu0 %v2473_v45  ;;  %v2414_v46 = vpop.f32.mrf.mxu1  ;;  %v2460_v47 = vpop.f32.mrf.mxu0 }
 0x564   : > { %v3573_v48 = vpop.f32.mrf.mxu1  ;;  %v3579_v33 = vpop.f32.mrf.mxu0 }
 0x566   : > { %2477 = vmax.xlane.f32.xlu0 %v2476_v49 }
 0x56b   : > { %2127 = vrot.lane.b32.xlu1 %v4371_v13, %s4041_s24 }
 0x5e3   : > { %v2469_v50 = vpop.xlane.xlu0 %2468  ;;  %v2472_v51 = vpop.xlane.xlu1 %2471 }
 0x5e4   : > { %v2479_v52 = vsub.f32 %v2463_v14, %v2469_v50  ;;  %v2480_v53 = vsub.f32 %v2464_v18, %v2472_v51 }
 0x5e6   : > { %v2483_v34 = vmul.f32 1.442695, %v2479_v52  ;;  %v2485_v54 = vmul.f32 1.442695, %v2480_v53 }
 0x5e8   : > { %3772 = vpow2.f32 %v2483_v34 }
 0x5e9   : > { %3774 = vpow2.f32 %v2485_v54 }
 0x5eb   : > { %v2475_v13 = vpop.xlane.xlu0 %2474 }
 0x5ec   : > { %v2481_v58 = vsub.f32 %v2465_v40, %v2475_v13 }
 0x5ee   : > { %v2487_v60 = vmul.f32 1.442695, %v2481_v58 }
 0x5ef   : > { %v2478_v59 = vpop.xlane.xlu0 %2477 }
 0x5f0   : > { %v2482_v6 = vsub.f32 %v2466_v44, %v2478_v59  ;;  %3776 = vpow2.f32 %v2487_v60 }
 0x5f2   : > { %v2489_v61 = vmul.f32 1.442695, %v2482_v6 }
 0x5f4   : > { %3778 = vpow2.f32 %v2489_v61 }
 0x5f5   : > { %v4639_v38 = vpop.eup %3772 }
 0x5f6   : > { %v4641_v55 = vpop.eup %3774  ;;  %v2491_v56 = vsel %vm1250_vm3, %v4639_v38, 0.0 }
 0x5f7   : > { %2492 = vadd.xlane.f32.xlu1 %v2491_v56  ;;  %v2494_v57 = vsel %vm1250_vm3, %v4641_v55, 0.0 }
 0x5f8   : > { %2495 = vadd.xlane.f32.xlu0 %v2494_v57 }
 0x5fd   : > { %v4653_v62 = vpop.eup %3776 }
 0x601   : > { %v4655_v63 = vpop.eup %3778 }
 0x608   : > { %2131 = vrot.lane.b32.xlu1 %v4487_v39, %s4041_s24  ;;  %v2497_v39 = vsel %vm1250_vm3, %v4653_v62, 0.0 }
 0x60c   : > { %2133 = vrot.lane.b32.xlu1 %v4493_v41, %s4041_s24  ;;  %v2500_v41 = vsel %vm1250_vm3, %v4655_v63, 0.0 }
 0x60e   : > { %2129 = vrot.lane.b32.xlu0 %v4473_v32, %s4041_s24  ;;  %v2128_v32 = vpop.permute.xlu1 %2127 }
 0x62d   : > { %2498 = vadd.xlane.f32.xlu0 %v2497_v39 }
 0x630   : > { %2501 = vadd.xlane.f32.xlu1 %v2500_v41 }
 0x680   : > { %v2493_v0 = vpop.xlane.xlu1 %2492 }
 0x681   : > { %v2496_v1 = vpop.xlane.xlu0 %2495  ;;  %3780 = vrcp.f32 %v2493_v0 }
 0x682   : > { %3782 = vrcp.f32 %v2496_v1 }
 0x684   : > { %v2132_v2 = vpop.permute.xlu1 %2131 }
 0x685   : > { %v2139_v4 = vcombine.low %v2128_v32, %v2132_v2  ;;  %v2140_v5 = vcombine.high %v2128_v32, %v2132_v2  ;;  %v2130_v7 = vpop.permute.xlu0 %2129 }
 0x687   : > { %v2147_v12 = vrot.slane %v2139_v4, %v4393_v27  ;;  %v2154_v14 = vrot.slane %v2140_v5, %v4393_v27 }
 0x688   : > { %v2134_v8 = vpop.permute.xlu1 %2133 }
 0x689   : > { %v2155_v9 = vcombine.low %v2130_v7, %v2134_v8  ;;  %v2156_v11 = vcombine.high %v2130_v7, %v2134_v8 }
 0x68b   : > { %v2163_v18 = vrot.slane %v2155_v9, %v4393_v27  ;;  %v2170_v19 = vrot.slane %v2156_v11, %v4393_v27 }
 0x68d   : > { %v2171_v20 = vcombine.low %v2147_v12, %v2163_v18  ;;  %v2172_v25 = vcombine.high %v2147_v12, %v2163_v18  ;;  %v2187_v26 = vcombine.low %v2154_v14, %v2170_v19  ;;  %v2188_v28 = vcombine.high %v2154_v14, %v2170_v19 }
 0x68e   : > { %v3781_v51 = vpop.eup %3780 }
 0x68f   : > { %v2179_v29 = vrot.slane %v2171_v20, %v4403_v37  ;;  %v2186_v15 = vrot.slane %v2172_v25, %v4403_v37  ;;  %v2195_v16 = vrot.slane %v2187_v26, %v4403_v37  ;;  %v2202_v35 = vrot.slane %v2188_v28, %v4403_v37  ;;  %v3783_v52 = vpop.eup %3782 }
 0x690   : > { %v2507_v61 = vmul.f32 %v3781_v51, %v4639_v38  ;;  %v2508_v39 = vmul.f32 %v3783_v52, %v4641_v55 }
 0x691   : > { %v2207_v36 = vcombine.low %v2179_v29, %v2186_v15  ;;  %v3420_v40 = vcombine.high %v2179_v29, %v2186_v15  ;;  %v2223_v42 = vcombine.low %v2195_v16, %v2202_v35  ;;  %v3421_v43 = vcombine.high %v2195_v16, %v2202_v35 }
 0x692   : > { %v2511_v2 = vpack.c.bf16 %v2507_v61, %v2507_v61  ;;  %v2512_v4 = vpack.c.bf16 %v2508_v39, %v2508_v39  ;;  %v3750_v39 = vld [vmem:[%s4882_s11 + $0x8] sm:$0xff]  }
 0x693   : > { %v2214_v44 = vrot.slane %v2207_v36, %v4393_v27  ;;  %v2222_v45 = vrot.slane %v3420_v40, %v4393_v27  ;;  %v2230_v46 = vrot.slane %v2223_v42, %v4393_v27  ;;  %v2238_v47 = vrot.slane %v3421_v43, %v4393_v27 }
 0x695   : > { %v2239_v48 = vcombine.low %v2214_v44, %v2222_v45  ;;  %v2255_v33 = vcombine.low %v2230_v46, %v2238_v47  ;;  %v2240_v49 = vcombine.high %v2214_v44, %v2222_v45  ;;  %v2256_v50 = vcombine.high %v2230_v46, %v2238_v47 }
 0x697   : > { %v2247_v53 = vrot.slane %v2239_v48, %v4403_v37  ;;  %v2263_v34 = vrot.slane %v2255_v33, %v4403_v37  ;;  %v2254_v54 = vrot.slane %v2240_v49, %v4403_v37  ;;  %v2270_v56 = vrot.slane %v2256_v50, %v4403_v37 }
 0x699   : > { %v2271_v57 = vcombine.low %v2247_v53, %v2263_v34  ;;  %v2272_v13 = vcombine.high %v2247_v53, %v2263_v34  ;;  %v2273_v58 = vcombine.low %v2254_v54, %v2270_v56  ;;  %v2274_v59 = vcombine.high %v2254_v54, %v2270_v56 }
 0x69b   : > { %v2275_v6 = vpack.c.bf16 %v2271_v57, %v2271_v57  ;;  %v2276_v60 = vpack.c.bf16 %v2272_v13, %v2272_v13  ;;  %v2277_v0 = vpack.c.bf16 %v2273_v58, %v2273_v58  ;;  %v2278_v1 = vpack.c.bf16 %v2274_v59, %v2274_v59 }
 0x69d   : > { %v2519_v41 = vsel %vm1490_vm4, %v2275_v6, 0  ;;  %v2565_v32 = vsel %vm1490_vm4, %v2276_v60, 0  ;;  %v2611_v38 = vsel %vm1490_vm4, %v2277_v0, 0  ;;  %v2657_v55 = vsel %vm1490_vm4, %v2278_v1, 0 }
 0x69e   : > { %3581 = vmatpush3.bf16.msra.mxu1 %v2519_v41  ;;  %3587 = vmatpush3.bf16.msra.mxu0 %v2565_v32 }
 0x69f   : > { %3592 = vmatprep.subr.bf16.mxu1 %v4033_v3  ;;  %3598 = vmatprep.subr.bf16.mxu0 %v4033_v3 }
 0x6a1   : > { %3583 = vmatmul.mubr.msk.bf16.vlgmr.msra.gmra.mxu1 %vm1250_vm3, %v2511_v2  ;;  %3589 = vmatmul.mubr.msk.bf16.vlgmr.msra.gmra.mxu0 %vm1250_vm3, %v2512_v4 }
 0x6a2   : > { %3593 = vmatpush3.bf16.msra.mxu1 %v2611_v38  ;;  %3599 = vmatpush3.bf16.msra.mxu0 %v2657_v55 }
 0x6a3   : > { %3594 = vmatprep.mubr.msk.bf16.mxu1 %vm4034_vm1, %v4033_v3  ;;  %3600 = vmatprep.mubr.msk.bf16.mxu0 %vm4034_vm1, %v4033_v3 }
 0x6a4   : > { %3604 = vmatprep.subr.bf16.mxu1 %v4033_v3  ;;  %3612 = vmatprep.subr.bf16.mxu0 %v4033_v3 }
 0x6b6   : > { %v2499_v5 = vpop.xlane.xlu0 %2498 }
 0x6b7   : > { %3784 = vrcp.f32 %v2499_v5  ;;  %v3751_v5 = vld [vmem:[%s4883_s12] sm:$0xff]  }
 0x6b9   : > { %v2502_v7 = vpop.xlane.xlu1 %2501 }
 0x6ba   : > { %3786 = vrcp.f32 %v2502_v7 }
 0x6c4   : > { %v3785_v8 = vpop.eup %3784 }
 0x6c5   : > { %v2509_v9 = vmul.f32 %v3785_v8, %v4653_v62 }
 0x6c7   : > { %v3787_v11 = vpop.eup %3786  ;;  %v2513_v12 = vpack.c.bf16 %v2509_v9, %v2509_v9 }
 0x6c8   : > { %v2510_v14 = vmul.f32 %v3787_v11, %v4655_v63 }
 0x6c9   : > { %3595 = vmatmul.mubr.msk.bf16.vlgmr.msra.gmra.mxu1 %vm1250_vm3, %v2513_v12 }
 0x6ca   : > { %v2514_v18 = vpack.c.bf16 %v2510_v14, %v2510_v14  ;;  %3608 = vmatprep.mubr.msk.bf16.mxu1 %vm4034_vm1, %v4033_v3  ;;  %3605 = vmatpush3.bf16.msra.mxu1 %v3750_v39 }
 0x6cb   : > { %3606 = vmatprep.subr.bf16.mxu1 %v4033_v3 }
 0x6cc   : > { %3601 = vmatmul.mubr.msk.bf16.vlgmr.msra.gmra.mxu0 %vm1250_vm3, %v2514_v18 }
 0x6cd   : > { %3616 = vmatprep.mubr.msk.bf16.mxu0 %vm4034_vm1, %v4033_v3 }
 0x6ce   : > { %3607 = vmatpush3.bf16.msra.mxu1 %v3751_v5 }
 0x6cf   : > { %3620 = vmatprep.subr.bf16.mxu1 %v4033_v3 }
 0x761   : > { %v2555_v19 = vpop.f32.mrf.mxu1  ;;  %v2601_v20 = vpop.f32.mrf.mxu0 }
 0x763   : > { %v3584_v25 = vpop.f32.mrf.mxu1  ;;  %v3590_v26 = vpop.f32.mrf.mxu0 }
 0x765   : > { %v2558_v62 = vpop.f32.mrf.mxu1  ;;  %v2604_v28 = vpop.f32.mrf.mxu0 }
 0x767   : > { %v3585_v29 = vpop.f32.mrf.mxu1  ;;  %v3591_v15 = vpop.f32.mrf.mxu0 }
 0x789   : > { %v2647_v63 = vpop.f32.mrf.mxu1 }
 0x78a   : > { %v2699_v16 = vcombine.low %v2555_v19, %v2647_v63  ;;  %v2700_v35 = vcombine.high %v2555_v19, %v2647_v63 }
 0x78b   : > { %v3596_v36 = vpop.f32.mrf.mxu1 }
 0x78c   : > { %v2693_v40 = vpop.f32.mrf.mxu0  ;;  %v2707_v46 = vrot.slane %v2699_v16, %v4393_v27  ;;  %v2714_v47 = vrot.slane %v2700_v35, %v4393_v27 }
 0x78d   : > { %v2650_v42 = vpop.f32.mrf.mxu1  ;;  %v2715_v43 = vcombine.low %v2601_v20, %v2693_v40  ;;  %v2716_v44 = vcombine.high %v2601_v20, %v2693_v40 }
 0x78e   : > { %v3602_v45 = vpop.f32.mrf.mxu0 }
 0x78f   : > { %v2723_v48 = vrot.slane %v2715_v43, %v4393_v27  ;;  %v2730_v33 = vrot.slane %v2716_v44, %v4393_v27  ;;  %v3597_v49 = vpop.f32.mrf.mxu1  ;;  %v3796_v43 = vld [vmem:[#allocation11] sm:$0xff] }
 0x790   : > { %v2696_v50 = vpop.f32.mrf.mxu0 }
 0x791   : > { %v2731_v51 = vcombine.low %v2707_v46, %v2723_v48  ;;  %v2732_v52 = vcombine.high %v2707_v46, %v2723_v48  ;;  %v2747_v53 = vcombine.low %v2714_v47, %v2730_v33  ;;  %v2748_v34 = vcombine.high %v2714_v47, %v2730_v33  ;;  %v3797_v33 = vld [vmem:[#allocation11 + $0x8] sm:$0xff] }
 0x792   : > { %v3603_v54 = vpop.f32.mrf.mxu0 }
 0x793   : > { %v2739_v56 = vrot.slane %v2731_v51, %v4403_v37  ;;  %v2746_v57 = vrot.slane %v2732_v52, %v4403_v37  ;;  %v2755_v13 = vrot.slane %v2747_v53, %v4403_v37  ;;  %v2762_v58 = vrot.slane %v2748_v34, %v4403_v37 }
 0x795   : > { %v2767_v59 = vcombine.low %v2739_v56, %v2746_v57  ;;  %v3430_v6 = vcombine.high %v2739_v56, %v2746_v57  ;;  %v2783_v60 = vcombine.low %v2755_v13, %v2762_v58  ;;  %v3431_v61 = vcombine.high %v2755_v13, %v2762_v58 }
 0x797   : > { %v2774_v41 = vrot.slane %v2767_v59, %v4393_v27  ;;  %v2782_v32 = vrot.slane %v3430_v6, %v4393_v27  ;;  %v2790_v0 = vrot.slane %v2783_v60, %v4393_v27  ;;  %v2798_v1 = vrot.slane %v3431_v61, %v4393_v27  ;;  %v3752_v6 = vld [vmem:[%s4885_s19 + $0x8] sm:$0xff]   ;;  %v3753_v60 = vld [vmem:[%s4886_s15] sm:$0xff]   ;;  %s4045_s19 = smov [#allocation11]  }
 0x798   : > { %3613 = vmatpush3.bf16.msra.mxu0 %v3752_v6  ;;  %s3160_s15 = sshll.u32 %s4045_s19, 4  ;;  %s3161_s15 = int_to_ptr.vmem [resolvable:$true] %s3160_s15 }
 0x799   : > { %v2800_v2 = vcombine.high %v2774_v41, %v2782_v32  ;;  %v2816_v4 = vcombine.high %v2790_v0, %v2798_v1  ;;  %v2799_v38 = vcombine.low %v2774_v41, %v2782_v32  ;;  %v2815_v55 = vcombine.low %v2790_v0, %v2798_v1  ;;  %3614 = vmatprep.subr.bf16.mxu0 %v4033_v3  ;;  %p3943_p13 = scmp.lt.s32.totalorder %s3161_s15, %s3161_s15 }
 0x79b   : > { %v2814_v7 = vrot.slane %v2800_v2, %v4403_v37  ;;  %v2830_v8 = vrot.slane %v2816_v4, %v4403_v37  ;;  %v2807_v9 = vrot.slane %v2799_v38, %v4403_v37  ;;  %v2823_v11 = vrot.slane %v2815_v55, %v4403_v37  ;;  %v3436_v38 = vld [vmem:[%s4887_s0] ss:$0 sm:$0xff] }
 0x79c   : > { %3615 = vmatpush3.bf16.msra.mxu0 %v3753_v60 }
 0x79d   : > { %v2833_v12 = vcombine.low %v2814_v7, %v2830_v8  ;;  %v2832_v27 = vcombine.high %v2807_v9, %v2823_v11  ;;  %v2831_v14 = vcombine.low %v2807_v9, %v2823_v11  ;;  %v2834_v20 = vcombine.high %v2814_v7, %v2830_v8  ;;  %v3437_v8 = vld [vmem:[%s701_s13] ss:$0 sm:$0xff] }
 0x79f   : > { %v3738_v18 = vpack.i.bf16 %v2833_v12, %v1806_v10  ;;  %v3733_v19 = vpack.i.bf16 %v2832_v27, %v1805_v17  ;;  %v3743_v37 = vpack.i.bf16 %v2834_v20, %v1807_v31 }
 0x7a1   : > { %3739 = vrot.lane.b32.xlu1 %v3738_v18, %s4042_s10  ;;  %3734 = vrot.lane.b32.xlu0 %v3733_v19, %s4043_s14  ;;  %v3755_v18 = vld [vmem:[%s612_s21] sm:$0xff]  }
 0x7a2   : > { %v3438_v19 = vld [vmem:[%s704_s25] ss:$0 sm:$0xff] }
 0x7a5   : > { %3744 = vrot.lane.b32.xlu0 %v3743_v37, %s4044_s27 }
 0x813   : > { %v3740_v25 = vpop.permute.xlu1 %3739  ;;  %v3735_v26 = vpop.permute.xlu0 %3734 }
 0x814   : > { %v3737_v62 = vunpack.i.h.bf16 %v3735_v26  ;;  %v3736_v10 = vunpack.i.l.bf16 %v3735_v26  ;;  %v3742_v28 = vunpack.i.h.bf16 %v3740_v25  ;;  %v3741_v29 = vunpack.i.l.bf16 %v3740_v25 }
 0x816   : > { %v1820_v17 = vsel %vm1250_vm3, %v1804_v30, %v3736_v10  ;;  %v2847_v15 = vsel %vm1250_vm3, %v2831_v14, %v3737_v62  ;;  %v3754_v14 = vld [vmem:[%s612_s21 + $0x8] sm:$0xff]  }
 0x817   : > { %v3745_v21 = vpop.permute.xlu0 %3744  ;;  %v1822_v63 = vsel %vm1821_vm5, %v1820_v17, %v3741_v29  ;;  %v2848_v16 = vsel %vm1821_vm5, %v2847_v15, %v3742_v28 }
 0x818   : > { %v3747_v22 = vunpack.i.h.bf16 %v3745_v21  ;;  %v3746_v31 = vunpack.i.l.bf16 %v3745_v21 }
 0x81a   : > { %v1824_v35 = vsel %vm1823_vm6, %v1822_v63, %v3746_v31  ;;  %v2849_v36 = vsel %vm1823_vm6, %v2848_v16, %v3747_v22 }
 0x81b   : > { %v2850_v40 = vpack.c.bf16 %v2849_v36, %v1824_v35 }
 0x81d   : > { %3609 = vmatmul.mubr.msk.bf16.vlgmr.msra.gmra.mxu1 %vm751_vm2, %v2850_v40 }
 0x81e   : > { %3624 = vmatprep.mubr.msk.bf16.mxu1 %vm4034_vm1, %v4033_v3  ;;  %3621 = vmatpush3.bf16.msra.mxu1 %v3754_v14 }
 0x81f   : > { %3622 = vmatprep.subr.bf16.mxu1 %v4033_v3  ;;  %v3442_v3 = vld [vmem:[%s707_s18] ss:$0 sm:$0xff] }
 0x822   : > { %3623 = vmatpush3.bf16.msra.mxu1 %v3755_v18 }
 0x8dd   : > { %v2911_v24 = vpop.f32.mrf.mxu1 }
 0x8de   : > { %v2912_v30 = vadd.f32 %v3432_v23, %v2911_v24 }
 0x8df   : > { %v3610_v42 = vpop.f32.mrf.mxu1 }
 0x8e0   : > { %v2918_v44 = vadd.f32 %v3796_v43, %v2912_v30 }
 0x8e1   : > { %v2914_v45 = vpop.f32.mrf.mxu1 }
 0x8e2   : > { %v2915_v46 = vadd.f32 %v3432_v23, %v2914_v45  ;;  %v2922_v47 = vsel %vm751_vm2, %v2918_v44, 0.0 }
 0x8e3   : > { %2923 = vadd.xlane.f32.xlu1 %v2922_v47  ;;  %v3611_v48 = vpop.f32.mrf.mxu1 }
 0x8e4   : > { %v2919_v49 = vadd.f32 %v3797_v33, %v2915_v46 }
 0x8e6   : > { %v2925_v50 = vsel %vm751_vm2, %v2919_v49, 0.0 }
 0x8e7   : > { %2926 = vadd.xlane.f32.xlu0 %v2925_v50 }
 0x96c   : > { %v2924_v51 = vpop.xlane.xlu1 %2923 }
 0x96d   : > { %v2929_v52 = vmul.f32 0.03125, %v2924_v51 }
 0x96f   : > { %v2931_v53 = vsub.f32 %v2918_v44, %v2929_v52 }
 0x970   : > { %v2927_v34 = vpop.xlane.xlu0 %2926 }
 0x971   : > { %v2930_v54 = vmul.f32 0.03125, %v2927_v34  ;;  %v2933_v56 = vmul.f32 %v2931_v53, %v2931_v53 }
 0x973   : > { %v2932_v57 = vsub.f32 %v2919_v49, %v2930_v54  ;;  %v2935_v13 = vsel %vm751_vm2, %v2933_v56, 0.0  ;;  %v3446_v56 = vld [vmem:[%s710_s22] ss:$0 sm:$0xff]  ;;  %s3936_s22 = scalar_lea.vmem %s3161_s15, 256 }
 0x974   : > { %2936 = vadd.xlane.f32.xlu0 %v2935_v13  ;;  %v3447_v13 = vld [vmem:[%s713_s29] ss:$0 sm:$0xff]  ;;  %p3937_p0 = scmp.ne.s32.totalorder %s3161_s15, %s3936_s22  ;;  %p3944_p3 = scmp.lt.s32.totalorder %s3936_s22, %s3936_s22 }
 0x975   : > { %v2934_v58 = vmul.f32 %v2932_v57, %v2932_v57 }
 0x976   : > { %p3938_p1 = pnand %p3937_p0, %p3664_p11  ;;  %p3945_p2 = por %p3944_p3, %p3943_p13 }
 0x977   : > { %v2938_v59 = vsel %vm751_vm2, %v2934_v58, 0.0 }
 0x978   : > { %2939 = vadd.xlane.f32.xlu1 %v2938_v59  ;;  %p3939_p12 = pneg %p3938_p1 }
 0x97a   : > { %p3946_p4 = pnand %p3945_p2, %p3939_p12 }
 0x9fd   : > { %v2937_v61 = vpop.xlane.xlu0 %2936 }
 0x9fe   : > { %v2941_v39 = vmul.f32 0.03125, %v2937_v61 }
 0xa00   : > { %v2943_v41 = vadd.f32 1e-05, %v2941_v39 }
 0xa01   : > { %v2940_v32 = vpop.xlane.xlu1 %2939 }
 0xa02   : > { %3788 = vrsqrt.f32 %v2943_v41  ;;  %v2942_v0 = vmul.f32 0.03125, %v2940_v32 }
 0xa04   : > { %v2944_v1 = vadd.f32 1e-05, %v2942_v0 }
 0xa06   : > { %3790 = vrsqrt.f32 %v2944_v1 }
 0xa0f   : > { %v3789_v2 = vpop.eup %3788 }
 0xa10   : > { %v2947_v4 = vmul.f32 %v3789_v2, %v2931_v53 }
 0xa12   : > { %v2955_v7 = vmul.f32 %v3436_v38, %v2947_v4 }
 0xa13   : > { %v3791_v55 = vpop.eup %3790 }
 0xa14   : > { %v2948_v5 = vmul.f32 %v3791_v55, %v2932_v57  ;;  %v2963_v11 = vadd.f32 %v3437_v8, %v2955_v7 }
 0xa16   : > { %v2956_v9 = vmul.f32 %v3436_v38, %v2948_v5 }
 0xa18   : > { %v2964_v12 = vadd.f32 %v3437_v8, %v2956_v9 }
 0xa1a   : > { %v2965_v27 = vpack.c.bf16 %v2964_v12, %v2963_v11 }
 0xa1c   : > { %3617 = vmatmul.mubr.msk.bf16.vlgmr.msra.gmra.mxu0 %vm751_vm2, %v2965_v27 }
 0xadc   : > { %v3026_v20 = vpop.f32.mrf.mxu0 }
 0xadd   : > { %v3027_v25 = vadd.f32 %v3438_v19, %v3026_v20 }
 0xade   : > { %v3618_v37 = vpop.f32.mrf.mxu0 }
 0xadf   : > { %v3033_v28 = vmax.f32 %v3027_v25, 0.0 }
 0xae0   : > { %v3029_v26 = vpop.f32.mrf.mxu0 }
 0xae1   : > { %v3030_v62 = vadd.f32 %v3438_v19, %v3029_v26 }
 0xae2   : > { %v3619_v10 = vpop.f32.mrf.mxu0 }
 0xae3   : > { %v3034_v29 = vmax.f32 %v3030_v62, 0.0 }
 0xae5   : > { %v3035_v17 = vpack.c.bf16 %v3034_v29, %v3033_v28 }
 0xae7   : > { %3625 = vmatmul.mubr.msk.bf16.vlgmr.msra.gmra.mxu1 %vm751_vm2, %v3035_v17 }
 0xba7   : > { %v3096_v15 = vpop.f32.mrf.mxu1 }
 0xba8   : > { %v3097_v21 = vadd.f32 %v3442_v3, %v3096_v15 }
 0xba9   : > { %v3626_v22 = vpop.f32.mrf.mxu1 }
 0xbaa   : > { %v3103_v31 = vadd.f32 %v3097_v21, %v2963_v11 }
 0xbab   : > { %v3099_v63 = vpop.f32.mrf.mxu1 }
 0xbac   : > { %v3100_v16 = vadd.f32 %v3442_v3, %v3099_v63  ;;  %v3107_v35 = vsel %vm751_vm2, %v3103_v31, 0.0 }
 0xbad   : > { %3108 = vadd.xlane.f32.xlu0 %v3107_v35  ;;  %v3627_v36 = vpop.f32.mrf.mxu1 }
 0xbae   : > { %v3104_v40 = vadd.f32 %v3100_v16, %v2964_v12 }
 0xbb0   : > { %v3110_v23 = vsel %vm751_vm2, %v3104_v40, 0.0 }
 0xbb1   : > { %3111 = vadd.xlane.f32.xlu1 %v3110_v23 }
 0xc36   : > { %v3109_v24 = vpop.xlane.xlu0 %3108 }
 0xc37   : > { %v3113_v30 = vmul.f32 0.03125, %v3109_v24 }
 0xc39   : > { %v3115_v42 = vsub.f32 %v3103_v31, %v3113_v30 }
 0xc3a   : > { %v3112_v43 = vpop.xlane.xlu1 %3111 }
 0xc3b   : > { %v3114_v44 = vmul.f32 0.03125, %v3112_v43  ;;  %v3117_v45 = vmul.f32 %v3115_v42, %v3115_v42 }
 0xc3d   : > { %v3116_v46 = vsub.f32 %v3104_v40, %v3114_v44  ;;  %v3119_v47 = vsel %vm751_vm2, %v3117_v45, 0.0 }
 0xc3e   : > { %3120 = vadd.xlane.f32.xlu0 %v3119_v47 }
 0xc3f   : > { %v3118_v48 = vmul.f32 %v3116_v46, %v3116_v46 }
 0xc41   : > { %v3122_v33 = vsel %vm751_vm2, %v3118_v48, 0.0 }
 0xc42   : > { %3123 = vadd.xlane.f32.xlu1 %v3122_v33 }
 0xcc7   : > { %v3121_v49 = vpop.xlane.xlu0 %3120 }
 0xcc8   : > { %v3125_v50 = vmul.f32 0.03125, %v3121_v49 }
 0xcca   : > { %v3127_v51 = vadd.f32 1e-05, %v3125_v50 }
 0xccb   : > { %v3124_v52 = vpop.xlane.xlu1 %3123 }
 0xccc   : > { %3792 = vrsqrt.f32 %v3127_v51  ;;  %v3126_v53 = vmul.f32 0.03125, %v3124_v52 }
 0xcce   : > { %v3128_v34 = vadd.f32 1e-05, %v3126_v53 }
 0xcd0   : > { %3794 = vrsqrt.f32 %v3128_v34 }
 0xcd9   : > { %v3793_v54 = vpop.eup %3792 }
 0xcda   : > { %v3131_v57 = vmul.f32 %v3793_v54, %v3115_v42 }
 0xcdc   : > { %v3139_v58 = vmul.f32 %v3446_v56, %v3131_v57 }
 0xcdd   : > { %v3795_v59 = vpop.eup %3794 }
 0xcde   : > { %v3132_v6 = vmul.f32 %v3795_v59, %v3116_v46  ;;  %v3147_v60 = vadd.f32 %v3447_v13, %v3139_v58 }
 0xce0   : > { %v3140_v61 = vmul.f32 %v3446_v56, %v3132_v6  ;;  %3149 = vst.msk [vmem:[#allocation11] sm:$0xff] %vm751_vm2, %v3147_v60 }
 0xce2   : > { %v3148_v39 = vadd.f32 %v3447_v13, %v3140_v61 }
 0xce4   : > { %3150 = vst.msk [vmem:[#allocation11 + $0x8] sm:$0xff] %vm751_vm2, %v3148_v39 }
 0xce5   : > { %3949 = shalt.err (!%p3946_p4)
}
 0xce6   : > { %s4046_s16 = smov 128   ;;  %s4891_s23 = sld [smem:[#allocation27_spill]] }
 0xcec   : > { %3641 = dma.vmem_to_hbm [thread:$0]  (%p3664_p11), %s3161_s15, 256, %s4891_s23, [#allocation4], %s4046_s16, %s4046_s16, %s4043_s14  }
 0xced   : > { %3997 = dma.done.wait (%p3664_p11), [#allocation4], 256  }
 0xcee   : > { %3999 = vsyncadd (%p3664_p11), [#allocation4], 4294967040 }
 0xcef PF: > { %s31_s30 = sadd.s32 1, %s4022_s30   ;;  %s4892_s0 = sld [smem:[#allocation16_spill]] }
 0xcf0   : > { %p28_p5 = scmp.ge.s32.totalorder %s31_s30, 4   ;;  %s4893_s27 = sld [smem:[#allocation19_spill]] }
 0xcf1   : > { %s4894_s28 = sld [smem:[#allocation17_spill]]  ;;  %s4896_s25 = smov %s4006_s26 }
 0xcf2   : > { %s4895_s29 = sld [smem:[#allocation18_spill]]  ;;  %30 = sbr.rel (!%p28_p5) target bundleno = 17 (0x11), region = 179 }
 0xcf5   : > { %s4897_s26 = smov %s4892_s0 }
 0xcf7   :  { %3176 = vsyncpa [#allocation3], 1 }
 0xcf8   :  { %3178 = vsyncpa [#allocation3 + $0x1], 1 }
 0xcf9   :  { %3179 = vsyncpa [#allocation6], 1 }
 0xcfa   :  { %3181 = vsyncpa [#allocation6 + $0x1], 1 }
 0xcfb   :  { %3182 = vsyncpa [#allocation9], 1 }
 0xcfc   :  { %3184 = vsyncpa [#allocation9 + $0x1], 1 }
 0xcfd   :  { %3185 = vsyncpa [#allocation4], 1 }
 0xcfe   :  { %3187 = vsyncpa [#allocation4 + $0x1], 1 }

</bundles_post_ra>
